<compile_context>
chip_gen: v6e
topology: v6e:2x2x1
jax: 0.10.0
libtpu: 0.0.40
codegen_flags: <defaults>
</compile_context>

<pallas_src>
import math

import jax
import jax.numpy as jnp
from jax import lax
from jax.experimental import pallas as pl
from jax.experimental.pallas import tpu as pltpu

# ----------------------------- model config ---------------------------------
B = 2            # batch
S = 8            # sequence length
D = 32           # d_model (== SublayerConnection size)
H = 4            # attention heads
DK = D // H      # per-head dim
DFF = 64         # feed-forward hidden dim
EPS = 1e-6
BS = B * S       # flattened rows (queries / keys)
L = 2            # number of stacked encoder layers processed in one pallas_call

# ------------------- packed per-layer parameter block (rows, cols) ----------
R_WATTN = 0      # rows 0:32,   cols 0:96  -> [wq*scale | wk | wv] ; cols 96:128 -> wo
R_W1    = 32     # rows 32:64,  cols 0:64  -> w1  (D, DFF)
R_W2    = 64     # rows 64:128, cols 0:32  -> w2  (DFF, D); cols 32:64 -> head mask (H*BS, D)
R_BATTN = 128    # row 128,     cols 0:96  -> [bq*scale | bk | bv] ; cols 96:128 -> bo
R_LN    = 136    # row 136,     cols 0:128 -> [ln1_a | ln1_b | ln2_a | ln2_b]
R_BFFN  = 144    # row 144,     cols 0:64  -> bf1 ; cols 64:96 -> bf2
P_ROWS  = 152
P_COLS  = 128


# ------------------------------ Pallas kernel -------------------------------
def _layer_norm(x, a, b):
    """a*(x-mean)/(std+eps)+b, UNBIASED std (matches torch.std default). Exact."""
    mean = jnp.mean(x, axis=-1, keepdims=True)
    var = jnp.sum((x - mean) ** 2, axis=-1, keepdims=True) * (1.0 / (x.shape[-1] - 1))
    return a * (x - mean) / (jnp.sqrt(var) + EPS) + b


def encoder_stack_kernel(x_ref, bias_ref, p_ref, o_ref, act_ref):
    layer = pl.program_id(0)

    # Layer 0: load the input activations into the carried VMEM scratch.
    @pl.when(layer == 0)
    def _():
        act_ref[...] = x_ref[...]

    x = act_ref[...]                     # (BS, D) activations carried across layers
    bias = bias_ref[...]                 # (BS, H*BS) additive mask bias (0 / -1e9)

    # ---- static slices of the packed per-layer parameter block ----
    w_qkv = p_ref[R_WATTN:R_WATTN + D, 0:3 * D]          # (D, 3D); wq pre-scaled
    wo    = p_ref[R_WATTN:R_WATTN + D, 3 * D:4 * D]      # (D, D)
    w1    = p_ref[R_W1:R_W1 + D, 0:DFF]                  # (D, DFF)
    w2    = p_ref[R_W2:R_W2 + DFF, 0:D]                  # (DFF, D)
    hmask = p_ref[R_W2:R_W2 + H * BS, D:2 * D]           # (H*BS, D) 0/1 head mask
    b_qkv = p_ref[R_BATTN:R_BATTN + 1, 0:3 * D]          # (1, 3D); bq pre-scaled
    bo    = p_ref[R_BATTN:R_BATTN + 1, 3 * D:4 * D]      # (1, D)
    ln1_a = p_ref[R_LN:R_LN + 1, 0:D]
    ln1_b = p_ref[R_LN:R_LN + 1, D:2 * D]
    ln2_a = p_ref[R_LN:R_LN + 1, 2 * D:3 * D]
    ln2_b = p_ref[R_LN:R_LN + 1, 3 * D:4 * D]
    bf1   = p_ref[R_BFFN:R_BFFN + 1, 0:DFF]
    bf2   = p_ref[R_BFFN:R_BFFN + 1, DFF:DFF + D]

    # ---- SublayerConnection 0: x + SelfAttn(LN1(x), mask)   (dropout p=0) ----
    h = _layer_norm(x, ln1_a, ln1_b)
    qkv = jnp.dot(h, w_qkv, preferred_element_type=jnp.float32) + b_qkv   # (BS, 3D)
    q = qkv[:, 0:D]              # already scaled by 1/sqrt(dk) via the packed weights
    k = qkv[:, D:2 * D]
    v = qkv[:, 2 * D:3 * D]

    # Block-diagonal head slabs: row block h of khead/vhead holds head h's K/V columns.
    khead = jnp.concatenate([k] * H, axis=0) * hmask     # (H*BS, D)
    vhead = jnp.concatenate([v] * H, axis=0) * hmask     # (H*BS, D)

    # One score matmul for all heads: column block h = q_h @ k_h^T.
    s = lax.dot_general(q, khead, (((1,), (1,)), ((), ())),
                        preferred_element_type=jnp.float32) + bias        # (BS, H*BS)
    # One softmax chain: global row max is a valid shift for every head segment.
    e = jnp.exp(s - jnp.max(s, axis=-1, keepdims=True))
    num = jnp.dot(e, vhead, preferred_element_type=jnp.float32)           # (BS, D)
    den = jnp.dot(e, hmask, preferred_element_type=jnp.float32)           # per-head sums
    attn = num / den                                                      # exact divide
    x1 = x + jnp.dot(attn, wo, preferred_element_type=jnp.float32) + bo

    # ---- SublayerConnection 1: x1 + FFN(LN2(x1)) ----
    h2 = _layer_norm(x1, ln2_a, ln2_b)
    hid = jnp.maximum(jnp.dot(h2, w1, preferred_element_type=jnp.float32) + bf1, 0.0)
    out = x1 + jnp.dot(hid, w2, preferred_element_type=jnp.float32) + bf2

    act_ref[...] = out            # carry to the next layer
    o_ref[...] = out              # resident output block (written back once at end)


# ------------------------------ wrapper --------------------------------------
def _head_mask():
    """(H*BS, D) 0/1 mask: row block h keeps only head h's feature columns."""
    rows = jnp.arange(H * BS)[:, None] // BS
    cols = jnp.arange(D)[None, :] // DK
    return (rows == cols).astype(jnp.float32)


def pack_layer_params(p):
    """Pack one layer's weights/biases/LN vectors into a lane-dense (P_ROWS,128) block.
    The 1/sqrt(dk) attention scale is folded into the Q weight/bias columns."""
    scale = 1.0 / math.sqrt(DK)
    blk = jnp.zeros((P_ROWS, P_COLS), jnp.float32)
    w_attn = jnp.concatenate([p["wq"] * scale, p["wk"], p["wv"], p["wo"]], axis=1)
    blk = blk.at[R_WATTN:R_WATTN + D, :].set(w_attn)
    blk = blk.at[R_W1:R_W1 + D, :DFF].set(p["w1"])
    blk = blk.at[R_W2:R_W2 + DFF, :D].set(p["w2"])
    blk = blk.at[R_W2:R_W2 + H * BS, D:2 * D].set(_head_mask())
    b_attn = jnp.concatenate([p["bq"] * scale, p["bk"], p["bv"], p["bo"]], axis=1)
    blk = blk.at[R_BATTN, :].set(b_attn[0])
    ln = jnp.concatenate([p["ln1_a"], p["ln1_b"], p["ln2_a"], p["ln2_b"]], axis=1)
    blk = blk.at[R_LN, :].set(ln[0])
    blk = blk.at[R_BFFN, :DFF].set(p["bf1"][0])
    blk = blk.at[R_BFFN, DFF:DFF + D].set(p["bf2"][0])
    return blk


def build_mask_bias(mask):
    """(BS, H*BS) additive bias: 0 where (same batch & key kept), else -1e9;
    tiled head-major to match the fused score matrix's column layout."""
    key_mask = mask.reshape(1, BS)                       # keys in (batch, pos) order
    rb = jnp.arange(BS)[:, None] // S
    cb = jnp.arange(BS)[None, :] // S
    keep = (rb == cb) & (key_mask != 0.0)
    bias = jnp.where(keep, 0.0, -1e9).astype(jnp.float32)   # (BS, BS)
    return jnp.tile(bias, (1, H))                            # (BS, H*BS)


def encoder_stack(x, mask, params_stack):
    """x: (B, S, D) f32; mask: (B, 1, S) f32 (1=keep); params_stack: (L, P_ROWS, 128)."""
    b, s, d = x.shape
    n_layers = params_stack.shape[0]
    x_flat = x.reshape(b * s, d)
    bias_full = build_mask_bias(mask)

    out_flat = pl.pallas_call(
        encoder_stack_kernel,
        out_shape=jax.ShapeDtypeStruct((b * s, d), jnp.float32),
        grid=(n_layers,),
        in_specs=[
            pl.BlockSpec((b * s, d), lambda l: (0, 0)),            # x (DMA'd once)
            pl.BlockSpec((b * s, H * b * s), lambda l: (0, 0)),    # mask bias (once)
            pl.BlockSpec((None, P_ROWS, P_COLS), lambda l: (l, 0, 0)),  # per-layer params
        ],
        out_specs=pl.BlockSpec((b * s, d), lambda l: (0, 0)),      # resident output
        scratch_shapes=[pltpu.VMEM((b * s, d), jnp.float32)],      # carried activations
        compiler_params=pltpu.CompilerParams(
            dimension_semantics=("arbitrary",)),                   # layers are sequential
    )(x_flat, bias_full, params_stack)
    return out_flat.reshape(b, s, d)


# --------------------------- pure-JAX reference -------------------------------
def reference_layer(x, mask, p):
    def ln(t, a, b):
        mean = t.mean(-1, keepdims=True)
        var = ((t - mean) ** 2).sum(-1, keepdims=True) / (t.shape[-1] - 1)
        return a * (t - mean) / (jnp.sqrt(var) + EPS) + b

    h = ln(x, p["ln1_a"], p["ln1_b"])
    q = h @ p["wq"] + p["bq"]
    k = h @ p["wk"] + p["bk"]
    v = h @ p["wv"] + p["bv"]
    q = q.reshape(B, S, H, DK).transpose(0, 2, 1, 3)
    k = k.reshape(B, S, H, DK).transpose(0, 2, 1, 3)
    v = v.reshape(B, S, H, DK).transpose(0, 2, 1, 3)
    scores = jnp.einsum("bhqd,bhkd->bhqk", q, k) / math.sqrt(DK)
    scores = jnp.where(mask[:, :, None, :] == 0.0, -1e9, scores)
    p_attn = jax.nn.softmax(scores, axis=-1)
    attn = jnp.einsum("bhqk,bhkd->bhqd", p_attn, v)
    attn = attn.transpose(0, 2, 1, 3).reshape(B, S, D)
    x1 = x + attn @ p["wo"] + p["bo"]
    h2 = ln(x1, p["ln2_a"], p["ln2_b"])
    ff = jnp.maximum(h2 @ p["w1"] + p["bf1"], 0.0) @ p["w2"] + p["bf2"]
    return x1 + ff


# --------------------------------- main ---------------------------------------
if __name__ == "__main__":
    key = jax.random.PRNGKey(0)
    keys = jax.random.split(key, L + 1)

    def init_layer(k):
        ks = jax.random.split(k, 16)

        def w(kk, shape):
            return jax.random.normal(kk, shape, jnp.float32) / math.sqrt(shape[0])

        def b(kk, n):
            return 0.1 * jax.random.normal(kk, (1, n), jnp.float32)

        return {
            "wq": w(ks[0], (D, D)), "bq": b(ks[1], D),
            "wk": w(ks[2], (D, D)), "bk": b(ks[3], D),
            "wv": w(ks[4], (D, D)), "bv": b(ks[5], D),
            "wo": w(ks[6], (D, D)), "bo": b(ks[7], D),
            "ln1_a": 1.0 + 0.1 * jax.random.normal(ks[8], (1, D), jnp.float32),
            "ln1_b": 0.1 * jax.random.normal(ks[9], (1, D), jnp.float32),
            "ln2_a": 1.0 + 0.1 * jax.random.normal(ks[10], (1, D), jnp.float32),
            "ln2_b": 0.1 * jax.random.normal(ks[11], (1, D), jnp.float32),
            "w1": w(ks[12], (D, DFF)), "bf1": b(ks[13], DFF),
            "w2": w(ks[14], (DFF, D)), "bf2": b(ks[15], D),
        }

    layer_params = [init_layer(k) for k in keys[1:]]
    x = jax.random.normal(keys[0], (B, S, D), jnp.float32)
    # mask: 1 = attend, 0 = masked.  Batch 1 has its last two keys masked.
    mask = jnp.ones((B, 1, S), jnp.float32).at[1, 0, -2:].set(0.0)

    params_stack = jnp.stack([pack_layer_params(p) for p in layer_params])  # (L,152,128)

    with jax.default_matmul_precision("float32"):
        out = encoder_stack(x, mask, params_stack)
        out = jax.block_until_ready(out)

        ref = x
        for p in layer_params:
            ref = reference_layer(ref, mask, p)

    assert out.shape == (B, S, D)
    err = jnp.max(jnp.abs(out - ref))
    assert jnp.allclose(out, ref, atol=1e-4, rtol=1e-4), f"max abs err {err}"
    print("KERNEL_OK")
</pallas_src>

<mosaic_0001>
module attributes {stable_mosaic.version = 11 : i64} {
  func.func @encoder_stack_kernel(%arg0: i32, %arg1: memref<16x32xf32, #tpu.memory_space<vmem>>, %arg2: memref<16x64xf32, #tpu.memory_space<vmem>>, %arg3: memref<1x152x128xf32, #tpu.memory_space<vmem>>, %arg4: memref<16x32xf32, #tpu.memory_space<vmem>>, %arg5: memref<16x32xf32, #tpu.memory_space<vmem>>) attributes {dimension_semantics = [#tpu.dimension_semantics<arbitrary>], iteration_bounds = array<i64: 2>, scalar_prefetch = 0 : i64, scratch_operands = 1 : i64, tpu.core_type = #tpu.core_type<tc>, window_params = [{pipeline_mode = #tpu.pipeline_mode<synchronous>, transform_indices = @transform_0, window_bounds = array<i64: 16, 32>}, {pipeline_mode = #tpu.pipeline_mode<synchronous>, transform_indices = @transform_1, window_bounds = array<i64: 16, 64>}, {transform_indices = @transform_2, window_bounds = array<i64: 1, 152, 128>}, {pipeline_mode = #tpu.pipeline_mode<synchronous>, transform_indices = @transform_3, window_bounds = array<i64: 16, 32>}]} {
    %c0_i32 = arith.constant 0 : i32
    %0 = arith.cmpi eq, %arg0, %c0_i32 : i32
    %1 = arith.extui %0 : i1 to i32
    %c0_i32_0 = arith.constant 0 : i32
    %2 = arith.cmpi ne, %1, %c0_i32_0 : i32
    scf.if %2 {
      %c0_59 = arith.constant 0 : index
      %c0_60 = arith.constant 0 : index
      %110 = vector.load %arg1[%c0_59, %c0_60] : memref<16x32xf32, #tpu.memory_space<vmem>>, vector<16x32xf32>
      %c0_61 = arith.constant 0 : index
      %c0_62 = arith.constant 0 : index
      %111 = vector.load %arg5[%c0_61, %c0_62] : memref<16x32xf32, #tpu.memory_space<vmem>>, vector<16x32xf32>
      tpu.vector_store %arg5[%c0_61, %c0_62], %110 {strides = array<i32>} : memref<16x32xf32, #tpu.memory_space<vmem>>, vector<16x32xf32>,
    } else {
    }
    %c0 = arith.constant 0 : index
    %c0_1 = arith.constant 0 : index
    %3 = vector.load %arg5[%c0, %c0_1] : memref<16x32xf32, #tpu.memory_space<vmem>>, vector<16x32xf32>
    %c0_2 = arith.constant 0 : index
    %c0_3 = arith.constant 0 : index
    %4 = vector.load %arg2[%c0_2, %c0_3] : memref<16x64xf32, #tpu.memory_space<vmem>>, vector<16x64xf32>
    %c0_4 = arith.constant 0 : index
    %c0_5 = arith.constant 0 : index
    %c0_6 = arith.constant 0 : index
    %5 = vector.load %arg3[%c0_4, %c0_5, %c0_6] : memref<1x152x128xf32, #tpu.memory_space<vmem>>, vector<1x32x96xf32>
    %6 = vector.shape_cast %5 : vector<1x32x96xf32> to vector<32x96xf32>
    %c0_7 = arith.constant 0 : index
    %c0_8 = arith.constant 0 : index
    %c96 = arith.constant 96 : index
    %7 = vector.load %arg3[%c0_7, %c0_8, %c96] : memref<1x152x128xf32, #tpu.memory_space<vmem>>, vector<1x32x32xf32>
    %8 = vector.shape_cast %7 : vector<1x32x32xf32> to vector<32x32xf32>
    %c0_9 = arith.constant 0 : index
    %c32 = arith.constant 32 : index
    %c0_10 = arith.constant 0 : index
    %9 = vector.load %arg3[%c0_9, %c32, %c0_10] : memref<1x152x128xf32, #tpu.memory_space<vmem>>, vector<1x32x64xf32>
    %10 = vector.shape_cast %9 : vector<1x32x64xf32> to vector<32x64xf32>
    %c0_11 = arith.constant 0 : index
    %c64 = arith.constant 64 : index
    %c0_12 = arith.constant 0 : index
    %11 = vector.load %arg3[%c0_11, %c64, %c0_12] : memref<1x152x128xf32, #tpu.memory_space<vmem>>, vector<1x64x32xf32>
    %12 = vector.shape_cast %11 : vector<1x64x32xf32> to vector<64x32xf32>
    %c0_13 = arith.constant 0 : index
    %c64_14 = arith.constant 64 : index
    %c32_15 = arith.constant 32 : index
    %13 = vector.load %arg3[%c0_13, %c64_14, %c32_15] : memref<1x152x128xf32, #tpu.memory_space<vmem>>, vector<1x64x32xf32>
    %14 = vector.shape_cast %13 : vector<1x64x32xf32> to vector<64x32xf32>
    %c0_16 = arith.constant 0 : index
    %c128 = arith.constant 128 : index
    %c0_17 = arith.constant 0 : index
    %15 = vector.load %arg3[%c0_16, %c128, %c0_17] : memref<1x152x128xf32, #tpu.memory_space<vmem>>, vector<1x1x96xf32>
    %16 = vector.shape_cast %15 : vector<1x1x96xf32> to vector<1x96xf32>
    %c0_18 = arith.constant 0 : index
    %c128_19 = arith.constant 128 : index
    %c96_20 = arith.constant 96 : index
    %17 = vector.load %arg3[%c0_18, %c128_19, %c96_20] : memref<1x152x128xf32, #tpu.memory_space<vmem>>, vector<1x1x32xf32>
    %18 = vector.shape_cast %17 : vector<1x1x32xf32> to vector<1x32xf32>
    %c0_21 = arith.constant 0 : index
    %c136 = arith.constant 136 : index
    %c0_22 = arith.constant 0 : index
    %19 = vector.load %arg3[%c0_21, %c136, %c0_22] : memref<1x152x128xf32, #tpu.memory_space<vmem>>, vector<1x1x32xf32>
    %20 = vector.shape_cast %19 : vector<1x1x32xf32> to vector<1x32xf32>
    %c0_23 = arith.constant 0 : index
    %c136_24 = arith.constant 136 : index
    %c32_25 = arith.constant 32 : index
    %21 = vector.load %arg3[%c0_23, %c136_24, %c32_25] : memref<1x152x128xf32, #tpu.memory_space<vmem>>, vector<1x1x32xf32>
    %22 = vector.shape_cast %21 : vector<1x1x32xf32> to vector<1x32xf32>
    %c0_26 = arith.constant 0 : index
    %c136_27 = arith.constant 136 : index
    %c64_28 = arith.constant 64 : index
    %23 = vector.load %arg3[%c0_26, %c136_27, %c64_28] : memref<1x152x128xf32, #tpu.memory_space<vmem>>, vector<1x1x32xf32>
    %24 = vector.shape_cast %23 : vector<1x1x32xf32> to vector<1x32xf32>
    %c0_29 = arith.constant 0 : index
    %c136_30 = arith.constant 136 : index
    %c96_31 = arith.constant 96 : index
    %25 = vector.load %arg3[%c0_29, %c136_30, %c96_31] : memref<1x152x128xf32, #tpu.memory_space<vmem>>, vector<1x1x32xf32>
    %26 = vector.shape_cast %25 : vector<1x1x32xf32> to vector<1x32xf32>
    %c0_32 = arith.constant 0 : index
    %c144 = arith.constant 144 : index
    %c0_33 = arith.constant 0 : index
    %27 = vector.load %arg3[%c0_32, %c144, %c0_33] : memref<1x152x128xf32, #tpu.memory_space<vmem>>, vector<1x1x64xf32>
    %28 = vector.shape_cast %27 : vector<1x1x64xf32> to vector<1x64xf32>
    %c0_34 = arith.constant 0 : index
    %c144_35 = arith.constant 144 : index
    %c64_36 = arith.constant 64 : index
    %29 = vector.load %arg3[%c0_34, %c144_35, %c64_36] : memref<1x152x128xf32, #tpu.memory_space<vmem>>, vector<1x1x32xf32>
    %30 = vector.shape_cast %29 : vector<1x1x32xf32> to vector<1x32xf32>
    %cst = arith.constant dense<0.000000e+00> : vector<16xf32>
    %31 = vector.multi_reduction <add>, %3, %cst [1] : vector<16x32xf32> to vector<16xf32>
    %32 = vector.shape_cast %31 : vector<16xf32> to vector<16x1xf32>
    %cst_37 = arith.constant 3.200000e+01 : f32
    %33 = vector.broadcast %cst_37 : f32 to vector<16x1xf32>
    %34 = arith.divf %32, %33 : vector<16x1xf32>
    %35 = vector.broadcast %34 : vector<16x1xf32> to vector<16x32xf32>
    %36 = arith.subf %3, %35 : vector<16x32xf32>
    %37 = arith.mulf %36, %36 : vector<16x32xf32>
    %cst_38 = arith.constant dense<0.000000e+00> : vector<16xf32>
    %38 = vector.multi_reduction <add>, %37, %cst_38 [1] : vector<16x32xf32> to vector<16xf32>
    %39 = vector.shape_cast %38 : vector<16xf32> to vector<16x1xf32>
    %cst_39 = arith.constant 0.0322580636 : f32
    %40 = vector.broadcast %cst_39 : f32 to vector<16x1xf32>
    %41 = arith.mulf %39, %40 : vector<16x1xf32>
    %42 = vector.broadcast %34 : vector<16x1xf32> to vector<16x32xf32>
    %43 = arith.subf %3, %42 : vector<16x32xf32>
    %44 = vector.broadcast %20 : vector<1x32xf32> to vector<16x32xf32>
    %45 = arith.mulf %44, %43 : vector<16x32xf32>
    %46 = math.sqrt %41 : vector<16x1xf32>
    %cst_40 = arith.constant 9.99999997E-7 : f32
    %47 = vector.broadcast %cst_40 : f32 to vector<16x1xf32>
    %48 = arith.addf %46, %47 : vector<16x1xf32>
    %49 = vector.broadcast %48 : vector<16x1xf32> to vector<16x32xf32>
    %50 = arith.divf %45, %49 : vector<16x32xf32>
    %51 = vector.broadcast %22 : vector<1x32xf32> to vector<16x32xf32>
    %52 = arith.addf %50, %51 : vector<16x32xf32>
    %cst_41 = arith.constant dense<0.000000e+00> : vector<16x96xf32>
    %53 = tpu.matmul %52, %6, %cst_41 {dimension_numbers = #tpu.dot_dimension_numbers<[1], [0], [0], [1], [0, 0, 1, 1], [], []>, precision = #tpu.contract_precision<fp32>} : vector<16x32xf32>, vector<32x96xf32>, vector<16x96xf32> -> vector<16x96xf32>
    %54 = vector.broadcast %16 : vector<1x96xf32> to vector<16x96xf32>
    %55 = arith.addf %53, %54 : vector<16x96xf32>
    %56 = vector.extract_strided_slice %55 {offsets = [0, 0], sizes = [16, 32], strides = [1, 1]} : vector<16x96xf32> to vector<16x32xf32>
    %57 = vector.extract_strided_slice %55 {offsets = [0, 32], sizes = [16, 32], strides = [1, 1]} : vector<16x96xf32> to vector<16x32xf32>
    %58 = vector.extract_strided_slice %55 {offsets = [0, 64], sizes = [16, 32], strides = [1, 1]} : vector<16x96xf32> to vector<16x32xf32>
    %59 = tpu.concatenate %57, %57, %57, %57 in 0 : vector<16x32xf32>, vector<16x32xf32>, vector<16x32xf32>, vector<16x32xf32> -> vector<64x32xf32>
    %60 = arith.mulf %59, %14 : vector<64x32xf32>
    %61 = tpu.concatenate %58, %58, %58, %58 in 0 : vector<16x32xf32>, vector<16x32xf32>, vector<16x32xf32>, vector<16x32xf32> -> vector<64x32xf32>
    %62 = arith.mulf %61, %14 : vector<64x32xf32>
    %cst_42 = arith.constant dense<0.000000e+00> : vector<16x64xf32>
    %63 = tpu.matmul %56, %60, %cst_42 {dimension_numbers = #tpu.dot_dimension_numbers<[1], [1], [0], [0], [0, 0, 1, 0], [], []>, precision = #tpu.contract_precision<fp32>} : vector<16x32xf32>, vector<64x32xf32>, vector<16x64xf32> -> vector<16x64xf32>
    %64 = arith.addf %63, %4 : vector<16x64xf32>
    %cst_43 = arith.constant dense<0xFF800000> : vector<16xf32>
    %65 = vector.multi_reduction <maximumf>, %64, %cst_43 [1] : vector<16x64xf32> to vector<16xf32>
    %66 = vector.shape_cast %65 : vector<16xf32> to vector<16x1xf32>
    %67 = vector.broadcast %66 : vector<16x1xf32> to vector<16x64xf32>
    %68 = arith.subf %64, %67 : vector<16x64xf32>
    %69 = math.exp %68 : vector<16x64xf32>
    %cst_44 = arith.constant dense<0.000000e+00> : vector<16x32xf32>
    %70 = tpu.matmul %69, %62, %cst_44 {dimension_numbers = #tpu.dot_dimension_numbers<[1], [0], [0], [1], [0, 0, 1, 1], [], []>, precision = #tpu.contract_precision<fp32>} : vector<16x64xf32>, vector<64x32xf32>, vector<16x32xf32> -> vector<16x32xf32>
    %cst_45 = arith.constant dense<0.000000e+00> : vector<16x32xf32>
    %71 = tpu.matmul %69, %14, %cst_45 {dimension_numbers = #tpu.dot_dimension_numbers<[1], [0], [0], [1], [0, 0, 1, 1], [], []>, precision = #tpu.contract_precision<fp32>} : vector<16x64xf32>, vector<64x32xf32>, vector<16x32xf32> -> vector<16x32xf32>
    %72 = arith.divf %70, %71 : vector<16x32xf32>
    %cst_46 = arith.constant dense<0.000000e+00> : vector<16x32xf32>
    %73 = tpu.matmul %72, %8, %cst_46 {dimension_numbers = #tpu.dot_dimension_numbers<[1], [0], [0], [1], [0, 0, 1, 1], [], []>, precision = #tpu.contract_precision<fp32>} : vector<16x32xf32>, vector<32x32xf32>, vector<16x32xf32> -> vector<16x32xf32>
    %74 = arith.addf %3, %73 : vector<16x32xf32>
    %75 = vector.broadcast %18 : vector<1x32xf32> to vector<16x32xf32>
    %76 = arith.addf %74, %75 : vector<16x32xf32>
    %cst_47 = arith.constant dense<0.000000e+00> : vector<16xf32>
    %77 = vector.multi_reduction <add>, %76, %cst_47 [1] : vector<16x32xf32> to vector<16xf32>
    %78 = vector.shape_cast %77 : vector<16xf32> to vector<16x1xf32>
    %cst_48 = arith.constant 3.200000e+01 : f32
    %79 = vector.broadcast %cst_48 : f32 to vector<16x1xf32>
    %80 = arith.divf %78, %79 : vector<16x1xf32>
    %81 = vector.broadcast %80 : vector<16x1xf32> to vector<16x32xf32>
    %82 = arith.subf %76, %81 : vector<16x32xf32>
    %83 = arith.mulf %82, %82 : vector<16x32xf32>
    %cst_49 = arith.constant dense<0.000000e+00> : vector<16xf32>
    %84 = vector.multi_reduction <add>, %83, %cst_49 [1] : vector<16x32xf32> to vector<16xf32>
    %85 = vector.shape_cast %84 : vector<16xf32> to vector<16x1xf32>
    %cst_50 = arith.constant 0.0322580636 : f32
    %86 = vector.broadcast %cst_50 : f32 to vector<16x1xf32>
    %87 = arith.mulf %85, %86 : vector<16x1xf32>
    %88 = vector.broadcast %80 : vector<16x1xf32> to vector<16x32xf32>
    %89 = arith.subf %76, %88 : vector<16x32xf32>
    %90 = vector.broadcast %24 : vector<1x32xf32> to vector<16x32xf32>
    %91 = arith.mulf %90, %89 : vector<16x32xf32>
    %92 = math.sqrt %87 : vector<16x1xf32>
    %cst_51 = arith.constant 9.99999997E-7 : f32
    %93 = vector.broadcast %cst_51 : f32 to vector<16x1xf32>
    %94 = arith.addf %92, %93 : vector<16x1xf32>
    %95 = vector.broadcast %94 : vector<16x1xf32> to vector<16x32xf32>
    %96 = arith.divf %91, %95 : vector<16x32xf32>
    %97 = vector.broadcast %26 : vector<1x32xf32> to vector<16x32xf32>
    %98 = arith.addf %96, %97 : vector<16x32xf32>
    %cst_52 = arith.constant dense<0.000000e+00> : vector<16x64xf32>
    %99 = tpu.matmul %98, %10, %cst_52 {dimension_numbers = #tpu.dot_dimension_numbers<[1], [0], [0], [1], [0, 0, 1, 1], [], []>, precision = #tpu.contract_precision<fp32>} : vector<16x32xf32>, vector<32x64xf32>, vector<16x64xf32> -> vector<16x64xf32>
    %100 = vector.broadcast %28 : vector<1x64xf32> to vector<16x64xf32>
    %101 = arith.addf %99, %100 : vector<16x64xf32>
    %cst_53 = arith.constant 0.000000e+00 : f32
    %102 = vector.broadcast %cst_53 : f32 to vector<16x64xf32>
    %103 = arith.maximumf %101, %102 : vector<16x64xf32>
    %cst_54 = arith.constant dense<0.000000e+00> : vector<16x32xf32>
    %104 = tpu.matmul %103, %12, %cst_54 {dimension_numbers = #tpu.dot_dimension_numbers<[1], [0], [0], [1], [0, 0, 1, 1], [], []>, precision = #tpu.contract_precision<fp32>} : vector<16x64xf32>, vector<64x32xf32>, vector<16x32xf32> -> vector<16x32xf32>
    %105 = arith.addf %76, %104 : vector<16x32xf32>
    %106 = vector.broadcast %30 : vector<1x32xf32> to vector<16x32xf32>
    %107 = arith.addf %105, %106 : vector<16x32xf32>
    %c0_55 = arith.constant 0 : index
    %c0_56 = arith.constant 0 : index
    %108 = vector.load %arg5[%c0_55, %c0_56] : memref<16x32xf32, #tpu.memory_space<vmem>>, vector<16x32xf32>
    tpu.vector_store %arg5[%c0_55, %c0_56], %107 {strides = array<i32>} : memref<16x32xf32, #tpu.memory_space<vmem>>, vector<16x32xf32>,
    %c0_57 = arith.constant 0 : index
    %c0_58 = arith.constant 0 : index
    %109 = vector.load %arg4[%c0_57, %c0_58] : memref<16x32xf32, #tpu.memory_space<vmem>>, vector<16x32xf32>
    tpu.vector_store %arg4[%c0_57, %c0_58], %107 {strides = array<i32>} : memref<16x32xf32, #tpu.memory_space<vmem>>, vector<16x32xf32>,
    return
  }
  func.func @transform_0(%arg0: i32) -> (i32, i32) {
    %c0_i32 = arith.constant 0 : i32
    %c0_i32_0 = arith.constant 0 : i32
    %c0_i32_1 = arith.constant 0 : i32
    return %c0_i32, %c0_i32_0 : i32, i32
  }
  func.func @transform_1(%arg0: i32) -> (i32, i32) {
    %c0_i32 = arith.constant 0 : i32
    %c0_i32_0 = arith.constant 0 : i32
    %c0_i32_1 = arith.constant 0 : i32
    return %c0_i32, %c0_i32_0 : i32, i32
  }
  func.func @transform_2(%arg0: i32) -> (i32, i32, i32) {
    %c0_i32 = arith.constant 0 : i32
    %c0_i32_0 = arith.constant 0 : i32
    %c0_i32_1 = arith.constant 0 : i32
    return %arg0, %c0_i32, %c0_i32_0 : i32, i32, i32
  }
  func.func @transform_3(%arg0: i32) -> (i32, i32) {
    %c0_i32 = arith.constant 0 : i32
    %c0_i32_0 = arith.constant 0 : i32
    %c0_i32_1 = arith.constant 0 : i32
    return %c0_i32, %c0_i32_0 : i32, i32
  }
}

</mosaic_0001>

<bundles_post_ra>
// kernel: tpu_custom_call.1
= control target key start
LH: loop header
LB: loop body
LE: loop exit
PB: predicated region body
PF: predicated region fallthrough
CT: control target
= control target key end

     0   :  { %8 = vsyncpa [#allocation4], 0  ;;  %s7251_s0 = inlined_call_operand.hbm [shape: f32[16,32], index: 0, kind: input, shape index: {}]   ;;  %s7252_s1 = inlined_call_operand.hbm [shape: f32[16,64], index: 1, kind: input, shape index: {}]   ;;  %s7253_s2 = inlined_call_operand.hbm [shape: f32[2,152,128], index: 2, kind: input, shape index: {}]   ;;  %s7254_s3 = inlined_call_operand.hbm [shape: f32[16,32], index: 3, kind: output, shape index: {}]  }
   0x1   :  { %9 = vsyncpa [#allocation7], 0 }
   0x2   :  { %10 = vsyncpa [#allocation5], 0  ;;  %s5885_s12 = smov 0   ;;  %s5887_s13 = smov 0  }
   0x3   :  { %s5889_s14 = smov 0   ;;  %s5891_s15 = smov 0  }
   0x4 LB: > { %s5904_s16 = sadd.s32 4294967295, %s5852_s15   ;;  %s5907_s17 = sadd.s32 1, %s5852_s15   ;;  %s5852_s15 = sphi %s5891_s15, %s7273_s15   ;;  %s5848_s14 = sphi %s5889_s14, %s7272_s14   ;;  %s5844_s13 = sphi %s5887_s13, %s7271_s13   ;;  %s5840_s12 = sphi %s5885_s12, %s7270_s12  }
   0x5   : > { %s62_s18 = ssub.s32 %s5852_s15, %s5907_s17  ;;  %s65_s19 = sadd.s32 1, %s5848_s14 }
   0x6   : > { %p63_p0 = scmp.eq.s32.totalorder %s62_s18, 0  ;;  %p72_p1 = scmp.ne.s32.totalorder %s5848_s14, %s5844_s13 }
   0x7   : > { %p73_p2 = scmp.eq.s32.totalorder %s5852_s15, 0  ;;  %p78_p3 = scmp.ne.s32.totalorder %s5844_s13, %s5840_s12 }
   0x8   : > { %s5917_s20 = scalar_select %p63_p0, %s5848_s14, %s65_s19  }
   0x9   : > { %p5919_p4 = por %p73_p2, %p72_p1  ;;  %p7255_p5 = scmp.eq.s32.totalorder %s5904_s16, 0 }
   0xa   : > { %p4572_p6 = scmp.ge.s32.totalorder %s5852_s15, 1  ;;  %p110_p7 = scmp.lt.s32.totalorder %s5852_s15, 3 }
   0xb   : > { %p5928_p8 = por %p7255_p5, %p78_p3  ;;  %s5854_s24 = smov [#allocation3]  }
   0xc   : > { %p5933_p10 = pnand %p4572_p6, %p110_p7  ;;  %s122_s25 = sshll.u32 %s5854_s24, 4  ;;  %s123_s25 = int_to_ptr.vmem [resolvable:$true] %s122_s25 }
   0xd   : > { %s7259_s22 = scalar_select %p5928_p8, 1, 0 }
   0xe   : > { %s7260_s23 = scalar_select %p5933_p10, 1, 0 }
   0xf   : > { %p5607_p11 = pneg %p5933_p10  ;;  %p5620_p13 = scmp.lt.s32.totalorder %s5852_s15, 2 }
  0x10   : > { %s5713_s28 = scalar_lea.vmem %s123_s25, 256  ;;  %p5721_p7 = scmp.lt.s32.totalorder %s123_s25, %s123_s25 }
  0x11   : > { %p5941_p12 = pnand %p5607_p11, %p7255_p5  ;;  %p5948_p0 = pnand %p5620_p13, %p5919_p4 }
  0x12   : > { %p5714_p2 = scmp.ne.s32.totalorder %s123_s25, %s5713_s28  ;;  %p5722_p11 = scmp.lt.s32.totalorder %s5713_s28, %s5713_s28 }
  0x13   : > { %p5704_p1 = pneg %p5941_p12 }
  0x14   : > { %p5723_p9 = por %p5722_p11, %p5721_p7 }
  0x15   : > { %p5716_p3 = pnand %p5714_p2, %p5704_p1 }
  0x17   : > { %p5717_p6 = pneg %p5716_p3 }
  0x19   : > { %p5724_p5 = pnand %p5723_p9, %p5717_p6 }
  0x1b   : > { %5727 = shalt.err (!%p5724_p5)
}
  0x1c   : > { %s5855_s29 = smov 128   ;;  %s5856_s30 = smov 8  }
  0x1d   : > { %5610 = dma.hbm_to_vmem [thread:$0]  (!%p5941_p12), %s7251_s0, 256, %s123_s25, [#allocation4], %s5855_s29, %s5855_s29, %s5856_s30  }
  0x1e   : > { %s5857_s6 = smov [#allocation6]   ;;  %s149_s8 = sand.u32 1, %s5852_s15  }
  0x1f   : > { %s135_s7 = sshll.u32 %s5857_s6, 4  ;;  %s136_s7 = int_to_ptr.vmem [resolvable:$true] %s135_s7 }
  0x20   : > { %s5739_s9 = scalar_lea.vmem %s136_s7, 256  ;;  %p5747_p13 = scmp.lt.s32.totalorder %s136_s7, %s136_s7 }
  0x21   : > { %p5740_p4 = scmp.ne.s32.totalorder %s136_s7, %s5739_s9  ;;  %p5748_p2 = scmp.lt.s32.totalorder %s5739_s9, %s5739_s9 }
  0x23   : > { %p5742_p5 = pnand %p5740_p4, %p5704_p1  ;;  %p5749_p3 = por %p5748_p2, %p5747_p13 }
  0x25   : > { %p5743_p9 = pneg %p5742_p5 }
  0x27   : > { %p5750_p6 = pnand %p5749_p3, %p5743_p9 }
  0x29   : > { %5753 = shalt.err (!%p5750_p6)
}
  0x2a   : > { %5613 = dma.hbm_to_vmem [thread:$0]  (!%p5941_p12), %s7252_s1, 256, %s136_s7, [#allocation7], %s5855_s29, %s5855_s29, %s5856_s30  }
  0x2b   : > { %s151_s12 = sand.u32 1, %s5848_s14   ;;  %s5591_s18 = smul.u32 2432, %s5852_s15 }
  0x2c   : > { %s5590_s19 = smul.u32 152, %s151_s12  ;;  %s5986_s4 = scalar_lea.sflag [#allocation4], %s149_s8 }
  0x2d   : > { %s5982_s25 = scalar_lea.hbm %s7253_s2, %s5591_s18  ;;  %p5756_p12 = pneg %p5948_p0 }
  0x2e   : > { %s153_s26 = scalar_lea.vmem [#allocation8], %s5590_s19  ;;  %s5754_s5 = scalar_lea.hbm %s5982_s25, 2432 }
  0x2f   : > { %s160_s28 = sshll.u32 %s153_s26, 4  ;;  %p5755_p1 = scmp.ne.s32.totalorder %s5982_s25, %s5754_s5  ;;  %s5984_s28 = int_to_ptr.vmem [resolvable:$true] %s160_s28 }
  0x30   : > { %s5759_s7 = scalar_lea.hbm %s7253_s2, 4864  ;;  %p5760_p4 = scmp.lt.s32.totalorder %s5982_s25, %s7253_s2 }
  0x31   : > { %p5757_p7 = pnand %p5756_p12, %p5755_p1  ;;  %p5761_p5 = scmp.lt.s32.totalorder %s5759_s7, %s5754_s5 }
  0x33   : > { %p5758_p11 = pneg %p5757_p7  ;;  %p5762_p9 = por %p5761_p5, %p5760_p4 }
  0x35   : > { %p5763_p13 = pnand %p5762_p9, %p5758_p11 }
  0x37   : > { %5766 = shalt.err (!%p5763_p13)
}
  0x38   : > { %s5767_s8 = scalar_lea.vmem %s5984_s28, 2432  ;;  %s5858_s11 = smov [#allocation8]  }
  0x39   : > { %p5768_p2 = scmp.ne.s32.totalorder %s5984_s28, %s5767_s8  ;;  %s5772_s12 = sshll.u32 %s5858_s11, 4  ;;  %s5773_s12 = int_to_ptr.vmem [resolvable:$false] %s5772_s12 }
  0x3a   : > { %s5774_s18 = scalar_lea.vmem %s5773_s12, 4864  ;;  %p5775_p1 = scmp.lt.s32.totalorder %s5984_s28, %s5773_s12 }
  0x3b   : > { %p5770_p3 = pnand %p5768_p2, %p5756_p12  ;;  %p5776_p7 = scmp.lt.s32.totalorder %s5774_s18, %s5767_s8 }
  0x3d   : > { %p5771_p6 = pneg %p5770_p3  ;;  %p5777_p8 = por %p5776_p7, %p5775_p1 }
  0x3f   : > { %p5778_p10 = pnand %p5777_p8, %p5771_p6 }
  0x41   : > { %5781 = shalt.err (!%p5778_p10)
}
  0x42   : > { %5617 = dma.hbm_to_vmem [thread:$0]  (!%p5948_p0), %s5982_s25, 2432, %s5984_s28, %s5986_s4, %s5855_s29, %s5855_s29, %s5856_s30  }
  0x43   : > { %p7263_p12 = scmp.ne.s32.totalorder %s7260_s23, 0 }
  0x44   : > { %p7264_p11 = scmp.eq.s32.totalorder (!%p7263_p12), %s5904_s16, 0 }
  0x45   : > { %172 = sbr.rel (%p7263_p12) target bundleno = 2708 (0xa94), region = 32 }
  0x4a   : > { %5823 = dma.done.wait (%p7264_p11), [#allocation4], 256   ;;  %p7265_p4 = pmov %p7264_p11 }
  0x4c   : > { %5825 = vsyncadd (%p7265_p4), [#allocation4], 4294967040  ;;  %p7266_p8 = pmov %p7265_p4 }
  0x4d   : > { %p7267_p10 = pmov %p7265_p4 }
  0x4e   : > { %5827 = dma.done.wait (%p7266_p8), [#allocation7], 256  }
  0x4f   : > { %5829 = vsyncadd (%p7267_p10), [#allocation7], 4294967040  ;;  %s182_s27 = sand.u32 1, %s5904_s16   ;;  %s184_s29 = sand.u32 1, %s5844_s13  }
  0x50   : > { %s5592_s30 = smul.u32 152, %s184_s29  ;;  %s183_s23 = scalar_lea.sflag [#allocation4], %s182_s27 }
  0x51   : > { %p7268_p0 = scmp.ne.s32.totalorder %s7259_s22, 0 }
  0x52   : > { %s6022_s19 = scalar_lea.vmem [#allocation8], %s5592_s30 }
  0x53   : > { %5831 = dma.done.wait (%p7268_p0), %s183_s23, 2432  }
  0x54   : > { %5833 = vsyncadd (%p7268_p0), %s183_s23, 4294964864  ;;  %p7269_p5 = scmp.ne.s32.totalorder %s5904_s16, 0 }
  0x56   : > { %207 = sbr.rel (%p7269_p5) target bundleno = 93 (0x5d), region = 48 }
  0x5b   : > { %v208_v0 = vld [vmem:[#allocation3] sm:$0xff]  ;;  %vm210_vm0 = vcmask 261120   ;;  %v209_v1 = vld [vmem:[#allocation3 + $0x8] sm:$0xff] }
  0x5c   : > { %211 = vst.msk [vmem:[#allocation2] sm:$0xff] %vm210_vm0, %v208_v0  ;;  %212 = vst.msk [vmem:[#allocation2 + $0x8] sm:$0xff] %vm210_vm0, %v209_v1 }
  0x5d PF: > { %vm236_vm1 = vcmask 261120   ;;  %v6033_v6 = vld [vmem:[%s6022_s19 + $0x88] ss:$0 sm:$0xff]  ;;  %s5859_s22 = smov 96   ;;  %v6048_v17 = vld [vmem:[%s6022_s19 + $0x18] sm:$0xff]  ;;  %v6054_v19 = vld [vmem:[%s6022_s19 + $0x10] sm:$0xff] }
  0x5e   : > { %v6051_v18 = vand.u32 4294901760, %v6048_v17  ;;  %v6061_v21 = vand.u32 4294901760, %v6054_v19  ;;  %v6065_v22 = vld [vmem:[%s6022_s19 + $0x8] sm:$0xff]  ;;  %v6080_v26 = vld [vmem:[%s6022_s19] sm:$0xff]  ;;  %s5860_s21 = smov 32   ;;  %s5861_s24 = smov 64  }
  0x5f   : > { %v6076_v25 = vand.u32 4294901760, %v6065_v22  ;;  %v6093_v30 = vand.u32 4294901760, %v6080_v26  ;;  %vm1502_vm6 = vcmask 523264   ;;  %s5862_s25 = smov [#allocation9]   ;;  %p5623_p9 = scmp.eq.s32.totalorder %s5904_s16, 1 }
  0x60   : > { %v6058_v20 = vsub.f32 %v6048_v17, %v6051_v18  ;;  %4936 = vmatprep.subr.mxu0 %v6051_v18  ;;  %v6073_v24 = vsub.f32 %v6054_v19, %v6061_v21  ;;  %s4499_s26 = sshll.u32 %s5862_s25, 4  ;;  %s4500_s26 = int_to_ptr.vmem [resolvable:$true] %s4499_s26 }
  0x61   : > { %4937 = vmatpush3.msra.mxu0 %v6051_v18  ;;  %v6090_v29 = vsub.f32 %v6065_v22, %v6076_v25  ;;  %v6104_v34 = vsub.f32 %v6080_v26, %v6093_v30  ;;  %s5782_s28 = scalar_lea.vmem %s4500_s26, 256  ;;  %p5789_p6 = scmp.lt.s32.totalorder %s4500_s26, %s4500_s26 }
  0x62   : > { %v6069_v23 = vand.u32 4294901760, %v6058_v20  ;;  %4938 = vmatprep.subr.mxu0 %v6061_v21  ;;  %v6086_v28 = vand.u32 4294901760, %v6073_v24  ;;  %p5783_p13 = scmp.ne.s32.totalorder %s4500_s26, %s5782_s28  ;;  %p5790_p1 = scmp.lt.s32.totalorder %s5782_s28, %s5782_s28 }
  0x63   : > { %v213_v2 = vld [vmem:[#allocation2] sm:$0xff]  ;;  %v214_v3 = vld [vmem:[#allocation2 + $0x8] sm:$0xff]  ;;  %4939 = vmatpush3.msra.mxu0 %v6061_v21  ;;  %v6100_v33 = vand.u32 4294901760, %v6090_v29  ;;  %v6111_v37 = vand.u32 4294901760, %v6104_v34 }
  0x64   : > { %v237_v4 = vsel %vm236_vm1, %v213_v2, 0.0  ;;  %v240_v5 = vsel %vm236_vm1, %v214_v3, 0.0  ;;  %v417_v27 = vsub.f32 %v6058_v20, %v6069_v23  ;;  %4940 = vmatprep.subr.mxu0 %v6076_v25  ;;  %v424_v32 = vsub.f32 %v6073_v24, %v6086_v28  ;;  %p5784_p2 = pnand %p5783_p13, %p5623_p9  ;;  %p5791_p7 = por %p5790_p1, %p5789_p6 }
  0x65   : > { %238 = vadd.xlane.f32.xlu0 %v237_v4  ;;  %4941 = vmatpush3.msra.mxu0 %v6076_v25  ;;  %v431_v36 = vsub.f32 %v6090_v29, %v6100_v33  ;;  %v438_v39 = vsub.f32 %v6104_v34, %v6111_v37 }
  0x66   : > { %v418_v31 = vand.u32 4294901760, %v417_v27  ;;  %4942 = vmatprep.subr.mxu0 %v6093_v30  ;;  %v425_v35 = vand.u32 4294901760, %v424_v32  ;;  %p5785_p3 = pneg %p5784_p2 }
  0x67   : > { %4943 = vmatpush3.msra.mxu0 %v6093_v30  ;;  %v432_v38 = vand.u32 4294901760, %v431_v36  ;;  %v439_v40 = vand.u32 4294901760, %v438_v39  ;;  %v6163_v39 = vld [vmem:[%s6022_s19 + $0x78] sm:$0xff] }
  0x68   : > { %4947 = vmatprep.subr.mxu1 %v418_v31  ;;  %4958 = vmatprep.subr.mxu0 %v6058_v20  ;;  %p5792_p12 = pnand %p5791_p7, %p5785_p3 }
  0x69   : > { %241 = vadd.xlane.f32.xlu0 %v240_v5  ;;  %4948 = vmatpush3.msra.mxu1 %v418_v31 }
  0x6a   : > { %4949 = vmatprep.subr.mxu1 %v425_v35 }
  0x6b   : > { %4950 = vmatpush3.msra.mxu1 %v425_v35 }
  0x6c   : > { %4951 = vmatprep.subr.mxu1 %v432_v38 }
  0x6d   : > { %4952 = vmatpush3.msra.mxu1 %v432_v38 }
  0x6e   : > { %4953 = vmatprep.subr.mxu1 %v439_v40 }
  0x6f   : > { %4954 = vmatpush3.msra.mxu1 %v439_v40 }
  0x70   : > { %4969 = vmatprep.subr.mxu1 %v6051_v18 }
  0x7f   : > { %285 = vrot.lane.b32.xlu0 %v6033_v6, %s5859_s22 }
  0xee   : > { %v239_v7 = vpop.xlane.xlu0 %238 }
  0xef   : > { %v244_v8 = vmul.f32 0.03125, %v239_v7 }
  0xf1   : > { %v6037_v9 = vsub.f32 %v213_v2, %v244_v8 }
  0xf2   : > { %v242_v10 = vpop.xlane.xlu0 %241 }
  0xf3   : > { %v245_v11 = vmul.f32 0.03125, %v242_v10  ;;  %v248_v12 = vmul.f32 %v6037_v9, %v6037_v9  ;;  %v262_v57 = vmul.f32 %v6033_v6, %v6037_v9 }
  0xf5   : > { %v6041_v13 = vsub.f32 %v214_v3, %v245_v11  ;;  %v250_v14 = vsel %vm236_vm1, %v248_v12, 0.0 }
  0xf6   : > { %251 = vadd.xlane.f32.xlu1 %v250_v14  ;;  %v6119_v59 = vpop.permute.xlu0 %285 }
  0xf7   : > { %v249_v15 = vmul.f32 %v6041_v13, %v6041_v13  ;;  %v263_v61 = vmul.f32 %v6033_v6, %v6041_v13 }
  0xf9   : > { %v253_v16 = vsel %vm236_vm1, %v249_v15, 0.0  ;;  %v6158_v15 = vld [vmem:[%s6022_s19 + $0x80] ss:$0 sm:$0xff] }
  0xfa   : > { %254 = vadd.xlane.f32.xlu1 %v253_v16 }
 0x17f   : > { %v252_v41 = vpop.xlane.xlu1 %251 }
 0x180   : > { %v256_v42 = vmul.f32 0.032258064, %v252_v41 }
 0x182   : > { %5667 = vrsqrt.f32 %v256_v42  ;;  %vm266_vm2 = vcmp.eq.f32.partialorder %v256_v42, inf  ;;  %v269_v47 = vand.u32 2147483648, %v256_v42  ;;  %vm268_vm3 = vcmp.eq.f32.partialorder %v256_v42, 0.0 }
 0x183   : > { %v255_v43 = vpop.xlane.xlu1 %254 }
 0x184   : > { %v257_v44 = vmul.f32 0.032258064, %v255_v43  ;;  %v6168_v43 = vld [vmem:[%s6022_s19 + $0x60] sm:$0xff] }
 0x186   : > { %5669 = vrsqrt.f32 %v257_v44  ;;  %vm273_vm4 = vcmp.eq.f32.partialorder %v257_v44, inf  ;;  %v276_v53 = vand.u32 2147483648, %v257_v44  ;;  %vm275_vm5 = vcmp.eq.f32.partialorder %v257_v44, 0.0 }
 0x18f   : > { %v5668_v45 = vpop.eup %5667 }
 0x190   : > { %v265_v46 = vmul.f32 %v5668_v45, %v256_v42 }
 0x192   : > { %v267_v48 = vsel %vm266_vm2, %v256_v42, %v265_v46  ;;  %v6175_v46 = vld [vmem:[%s6022_s19 + $0x70] sm:$0xff] }
 0x193   : > { %v5670_v49 = vpop.eup %5669  ;;  %v270_v50 = vsel %vm268_vm3, %v269_v47, %v267_v48 }
 0x194   : > { %v278_v51 = vadd.f32 1e-06, %v270_v50  ;;  %v272_v52 = vmul.f32 %v5670_v49, %v257_v44  ;;  %v6185_v50 = vld [vmem:[%s6022_s19 + $0x50] sm:$0xff] }
 0x196   : > { %5671 = vrcp.f32 %v278_v51  ;;  %v274_v54 = vsel %vm273_vm4, %v257_v44, %v272_v52  ;;  %v6192_v52 = vld [vmem:[%s6022_s19 + $0x68] sm:$0xff] }
 0x197   : > { %v277_v55 = vsel %vm275_vm5, %v276_v53, %v274_v54 }
 0x198   : > { %v279_v56 = vadd.f32 1e-06, %v277_v55  ;;  %v6201_v55 = vld [vmem:[%s6022_s19 + $0x40] sm:$0xff] }
 0x19a   : > { %5673 = vrcp.f32 %v279_v56 }
 0x1a3   : > { %v5672_v58 = vpop.eup %5671 }
 0x1a4   : > { %v281_v60 = vmul.f32 %v5672_v58, %v262_v57 }
 0x1a6   : > { %v288_v62 = vadd.f32 %v6119_v59, %v281_v60  ;;  %v6211_v60 = vld [vmem:[%s6022_s19 + $0x58] sm:$0xff] }
 0x1a7   : > { %v5674_v63 = vpop.eup %5673 }
 0x1a8   : > { %v283_v0 = vmul.f32 %v5674_v63, %v263_v61  ;;  %v295_v1 = vsel %vm236_vm1, %v288_v62, 0 }
 0x1a9   : > { %v369_v2 = vand.u32 4294901760, %v295_v1 }
 0x1aa   : > { %v289_v3 = vadd.f32 %v6119_v59, %v283_v0  ;;  %v6220_v0 = vld [vmem:[%s6022_s19 + $0x48] sm:$0xff] }
 0x1ab   : > { %4955 = vmatprep.mubr.f32.mxu1 %v369_v2  ;;  %v370_v4 = vsub.f32 %v295_v1, %v369_v2 }
 0x1ac   : > { %v298_v5 = vsel %vm236_vm1, %v289_v3, 0 }
 0x1ad   : > { %v379_v7 = vand.u32 4294901760, %v298_v5  ;;  %v371_v8 = vand.u32 4294901760, %v370_v4 }
 0x1af   : > { %4956 = vmatmul.mubr.f32.vlgmr.msra.gmra.mxu1 %v379_v7  ;;  %v372_v9 = vsub.f32 %v370_v4, %v371_v8  ;;  %v380_v10 = vsub.f32 %v298_v5, %v379_v7 }
 0x1b0   : > { %4970 = vmatpush3.msra.mxu1 %v6051_v18  ;;  %4977 = vmatprep.mubr.f32.mxu1 %v371_v8 }
 0x1b1   : > { %4971 = vmatprep.subr.mxu1 %v6061_v21  ;;  %v373_v6 = vand.u32 4294901760, %v372_v9  ;;  %v381_v11 = vand.u32 4294901760, %v380_v10 }
 0x1b2   : > { %4972 = vmatpush3.msra.mxu1 %v6061_v21 }
 0x1b3   : > { %4973 = vmatprep.subr.mxu1 %v6076_v25  ;;  %4944 = vmatprep.mubr.f32.mxu0 %v373_v6  ;;  %v382_v12 = vsub.f32 %v380_v10, %v381_v11 }
 0x1b4   : > { %4974 = vmatpush3.msra.mxu1 %v6076_v25 }
 0x1b5   : > { %4975 = vmatprep.subr.mxu1 %v6093_v30  ;;  %v383_v13 = vand.u32 4294901760, %v382_v12 }
 0x1b6   : > { %4976 = vmatpush3.msra.mxu1 %v6093_v30 }
 0x1b7   : > { %4978 = vmatmul.mubr.f32.vlgmr.msra.gmra.mxu1 %v381_v11  ;;  %4991 = vmatprep.subr.mxu1 %v6051_v18 }
 0x1b8   : > { %4945 = vmatmul.mubr.f32.vlgmr.msra.gmra.mxu0 %v383_v13  ;;  %4992 = vmatpush3.msra.mxu1 %v6051_v18 }
 0x1b9   : > { %4959 = vmatpush3.msra.mxu0 %v6058_v20  ;;  %4999 = vmatprep.mubr.f32.mxu1 %v369_v2 }
 0x1ba   : > { %4960 = vmatprep.subr.mxu0 %v6073_v24  ;;  %4966 = vmatprep.mubr.f32.mxu0 %v370_v4 }
 0x1bb   : > { %4993 = vmatprep.subr.mxu1 %v6061_v21  ;;  %4961 = vmatpush3.msra.mxu0 %v6073_v24 }
 0x1bc   : > { %4994 = vmatpush3.msra.mxu1 %v6061_v21  ;;  %4962 = vmatprep.subr.mxu0 %v6090_v29 }
 0x1bd   : > { %4995 = vmatprep.subr.mxu1 %v6076_v25  ;;  %4963 = vmatpush3.msra.mxu0 %v6090_v29 }
 0x1be   : > { %4996 = vmatpush3.msra.mxu1 %v6076_v25  ;;  %4964 = vmatprep.subr.mxu0 %v6104_v34 }
 0x1bf   : > { %4997 = vmatprep.subr.mxu1 %v6093_v30  ;;  %4965 = vmatpush3.msra.mxu0 %v6104_v34 }
 0x1c0   : > { %4998 = vmatpush3.msra.mxu1 %v6093_v30  ;;  %4967 = vmatmul.mubr.f32.vlgmr.msra.gmra.mxu0 %v380_v10 }
 0x1c1   : > { %4980 = vmatprep.subr.mxu0 %v6069_v23  ;;  %5000 = vmatmul.mubr.f32.vlgmr.msra.gmra.mxu1 %v379_v7 }
 0x1c2   : > { %4981 = vmatpush3.msra.mxu0 %v6069_v23  ;;  %4988 = vmatprep.mubr.f32.mxu0 %v369_v2 }
 0x1c3   : > { %4982 = vmatprep.subr.mxu0 %v6086_v28 }
 0x1c4   : > { %4983 = vmatpush3.msra.mxu0 %v6086_v28 }
 0x1c5   : > { %4984 = vmatprep.subr.mxu0 %v6100_v33 }
 0x1c6   : > { %4985 = vmatpush3.msra.mxu0 %v6100_v33 }
 0x1c7   : > { %4986 = vmatprep.subr.mxu0 %v6111_v37 }
 0x1c8   : > { %4987 = vmatpush3.msra.mxu0 %v6111_v37 }
 0x1c9   : > { %4989 = vmatmul.mubr.f32.vlgmr.msra.gmra.mxu0 %v379_v7 }
 0x26f   : > { %v4957_v16 = vpop.f32.mrf.mxu1 }
 0x271   : > { %v476_v24 = vpop.f32.mrf.mxu1 }
 0x277   : > { %v4979_v27 = vpop.f32.mrf.mxu1 }
 0x278   : > { %v4946_v14 = vpop.f32.mrf.mxu0 }
 0x279   : > { %v386_v20 = vadd.f32 %v4946_v14, %v6158_v15  ;;  %v646_v32 = vpop.f32.mrf.mxu1 }
 0x27a   : > { %v375_v18 = vpop.f32.mrf.mxu0 }
 0x27b   : > { %v376_v21 = vadd.f32 %v6158_v15, %v375_v18  ;;  %v483_v25 = vadd.f32 %v4957_v16, %v386_v20 }
 0x27d   : > { %v477_v30 = vadd.f32 %v476_v24, %v376_v21 }
 0x280   : > { %v4968_v23 = vpop.f32.mrf.mxu0 }
 0x281   : > { %v570_v29 = vadd.f32 %v4968_v23, %v483_v25  ;;  %v5001_v34 = vpop.f32.mrf.mxu1 }
 0x282   : > { %v562_v28 = vpop.f32.mrf.mxu0 }
 0x283   : > { %v563_v31 = vadd.f32 %v562_v28, %v477_v30  ;;  %v655_v33 = vadd.f32 %v4979_v27, %v570_v29  ;;  %v818_v42 = vpop.f32.mrf.mxu1 }
 0x285   : > { %v647_v37 = vadd.f32 %v646_v32, %v563_v31 }
 0x289   : > { %v4990_v35 = vpop.f32.mrf.mxu0 }
 0x28a   : > { %v744_v36 = vadd.f32 %v4990_v35, %v655_v33 }
 0x28b   : > { %v737_v38 = vpop.f32.mrf.mxu0 }
 0x28c   : > { %v6165_v40 = vadd.f32 %v5001_v34, %v744_v36  ;;  %v738_v41 = vadd.f32 %v737_v38, %v647_v37 }
 0x28e   : > { %v6170_v44 = vadd.f32 %v818_v42, %v738_v41  ;;  %v835_v45 = vmul.f32 %v6165_v40, %v6163_v39  ;;  %v833_v57 = vmul.f32 %v6165_v40, %v6192_v52  ;;  %v831_v63 = vmul.f32 %v6165_v40, %v6211_v60 }
 0x28f   : > { %v829_v1 = vmul.f32 %v6165_v40, %v6220_v0  ;;  %v904_v42 = vsel %vm236_vm1, %v6165_v40, 0 }
 0x290   : > { %898 = vrot.lane.b32.xlu1 %v835_v45, %s5859_s22  ;;  %v832_v47 = vmul.f32 %v6170_v44, %v6168_v43  ;;  %v901_v48 = vsel %vm236_vm1, %v6170_v44, 0  ;;  %v834_v51 = vmul.f32 %v6170_v44, %v6175_v46  ;;  %v830_v54 = vmul.f32 %v6170_v44, %v6185_v50 }
 0x291   : > { %v6182_v49 = vand.u32 4294901760, %v901_v48  ;;  %v828_v61 = vmul.f32 %v6170_v44, %v6201_v55 }
 0x292   : > { %892 = vrot.lane.b32.xlu0 %v832_v47, %s5859_s22 }
 0x293   : > { %5037 = vmatprep.mubr.f32.mxu1 %v6182_v49  ;;  %v6195_v53 = vsub.f32 %v901_v48, %v6182_v49 }
 0x294   : > { %896 = vrot.lane.b32.xlu1 %v834_v51, %s5859_s22 }
 0x295   : > { %v997_v56 = vand.u32 4294901760, %v6195_v53 }
 0x296   : > { %888 = vrot.lane.b32.xlu0 %v830_v54, %s5859_s22 }
 0x297   : > { %v998_v58 = vsub.f32 %v6195_v53, %v997_v56 }
 0x298   : > { %894 = vrot.lane.b32.xlu1 %v833_v57, %s5859_s22 }
 0x299   : > { %v999_v62 = vand.u32 4294901760, %v998_v58 }
 0x29a   : > { %884 = vrot.lane.b32.xlu0 %v828_v61, %s5859_s22 }
 0x29b   : > { %5018 = vmatprep.mubr.f32.mxu0 %v999_v62 }
 0x29c   : > { %890 = vrot.lane.b32.xlu1 %v831_v63, %s5859_s22  ;;  %v6318_v63 = vand.u32 4294901760, %v904_v42 }
 0x29e   : > { %856 = vrot.lane.b32.xlu0 %v6175_v46, %s5860_s21 }
 0x2a0   : > { %886 = vrot.lane.b32.xlu1 %v829_v1, %s5859_s22 }
 0x2a2   : > { %852 = vrot.lane.b32.xlu0 %v6168_v43, %s5860_s21 }
 0x2a4   : > { %858 = vrot.lane.b32.xlu1 %v6163_v39, %s5860_s21 }
 0x2a6   : > { %848 = vrot.lane.b32.xlu0 %v6185_v50, %s5860_s21 }
 0x2a8   : > { %854 = vrot.lane.b32.xlu1 %v6192_v52, %s5860_s21 }
 0x2aa   : > { %844 = vrot.lane.b32.xlu0 %v6201_v55, %s5860_s21 }
 0x2ac   : > { %850 = vrot.lane.b32.xlu1 %v6211_v60, %s5860_s21 }
 0x2b0   : > { %846 = vrot.lane.b32.xlu1 %v6220_v0, %s5860_s21 }
 0x302   : > { %v899_v2 = vpop.permute.xlu1 %898 }
 0x303   : > { %v920_v3 = vsel %vm236_vm1, %v899_v2, 0 }
 0x304   : > { %v6243_v4 = vand.u32 4294901760, %v920_v3  ;;  %v893_v5 = vpop.permute.xlu0 %892 }
 0x305   : > { %v914_v7 = vsel %vm236_vm1, %v893_v5, 0 }
 0x306   : > { %v6247_v8 = vsub.f32 %v920_v3, %v6243_v4  ;;  %v6249_v9 = vand.u32 4294901760, %v914_v7  ;;  %5002 = vmatprep.subr.mxu0 %v6243_v4  ;;  %v897_v10 = vpop.permute.xlu1 %896 }
 0x307   : > { %v918_v6 = vsel %vm236_vm1, %v897_v10, 0  ;;  %5003 = vmatpush3.xpose.msra.mxu0 %v6243_v4 }
 0x308   : > { %v6254_v11 = vand.u32 4294901760, %v918_v6  ;;  %v889_v12 = vpop.permute.xlu0 %888  ;;  %v6257_v13 = vand.u32 4294901760, %v6247_v8  ;;  %v6260_v14 = vsub.f32 %v914_v7, %v6249_v9 }
 0x309   : > { %v910_v18 = vsel %vm236_vm1, %v889_v12, 0 }
 0x30a   : > { %v6263_v16 = vsub.f32 %v918_v6, %v6254_v11  ;;  %5004 = vmatprep.subr.mxu0 %v6254_v11  ;;  %v895_v20 = vpop.permute.xlu1 %894  ;;  %v1035_v21 = vsub.f32 %v6247_v8, %v6257_v13  ;;  %v6276_v29 = vand.u32 4294901760, %v910_v18  ;;  %v6285_v33 = vand.u32 4294901760, %v6260_v14 }
 0x30b   : > { %v916_v23 = vsel %vm236_vm1, %v895_v20, 0  ;;  %5005 = vmatpush3.xpose.msra.mxu0 %v6254_v11 }
 0x30c   : > { %v6271_v24 = vand.u32 4294901760, %v916_v23  ;;  %v885_v25 = vpop.permute.xlu0 %884  ;;  %v1036_v27 = vand.u32 4294901760, %v1035_v21  ;;  %v6274_v28 = vand.u32 4294901760, %v6263_v16  ;;  %v6298_v41 = vsub.f32 %v910_v18, %v6276_v29 }
 0x30d   : > { %v906_v45 = vsel %vm236_vm1, %v885_v25, 0  ;;  %v1056_v54 = vsub.f32 %v6260_v14, %v6285_v33  ;;  %v6334_v18 = vsub.f32 %v904_v42, %v6318_v63 }
 0x30e   : > { %v6279_v30 = vsub.f32 %v916_v23, %v6271_v24  ;;  %5006 = vmatprep.subr.mxu0 %v6271_v24  ;;  %5021 = vmatprep.subr.mxu1 %v1036_v27  ;;  %v891_v31 = vpop.permute.xlu1 %890  ;;  %v1042_v32 = vsub.f32 %v6263_v16, %v6274_v28  ;;  %v6320_v1 = vand.u32 4294901760, %v906_v45  ;;  %v6328_v6 = vand.u32 4294901760, %v6298_v41 }
 0x30f   : > { %v912_v34 = vsel %vm236_vm1, %v891_v31, 0  ;;  %5007 = vmatpush3.xpose.msra.mxu0 %v6271_v24  ;;  %5022 = vmatpush3.xpose.msra.mxu1 %v1036_v27  ;;  %v1057_v7 = vand.u32 4294901760, %v1056_v54 }
 0x310   : > { %v6289_v35 = vand.u32 4294901760, %v912_v34  ;;  %5008 = vmatprep.subr.mxu0 %v6249_v9  ;;  %v6292_v36 = vpop.permute.xlu0 %856  ;;  %v1043_v37 = vand.u32 4294901760, %v1042_v32  ;;  %v6295_v38 = vand.u32 4294901760, %v6279_v30  ;;  %v6338_v20 = vsub.f32 %v906_v45, %v6320_v1 }
 0x311   : > { %v1070_v25 = vsub.f32 %v6298_v41, %v6328_v6 }
 0x312   : > { %v6304_v47 = vsub.f32 %v912_v34, %v6289_v35  ;;  %5023 = vmatprep.subr.mxu1 %v1043_v37  ;;  %v887_v48 = vpop.permute.xlu1 %886  ;;  %v1049_v51 = vsub.f32 %v6279_v30, %v6295_v38 }
 0x313   : > { %v908_v57 = vsel %vm236_vm1, %v887_v48, 0  ;;  %5009 = vmatpush3.xpose.msra.mxu0 %v6249_v9  ;;  %5024 = vmatpush3.xpose.msra.mxu1 %v1043_v37  ;;  %v1007_v37 = vand.u32 4294901760, %v6334_v18  ;;  %v1071_v45 = vand.u32 4294901760, %v1070_v25 }
 0x314   : > { %v6312_v58 = vand.u32 4294901760, %v908_v57  ;;  %5010 = vmatprep.subr.mxu0 %v6289_v35  ;;  %v1050_v61 = vand.u32 4294901760, %v1049_v51  ;;  %v6316_v62 = vand.u32 4294901760, %v6304_v47  ;;  %v853_v3 = vpop.permute.xlu0 %852  ;;  %v6355_v51 = vand.u32 4294901760, %v6338_v20 }
 0x315   : > { %v872_v31 = vmul.f32 %v853_v3, %v6170_v44 }
 0x316   : > { %v6323_v2 = vsub.f32 %v908_v57, %v6312_v58  ;;  %5025 = vmatprep.subr.mxu1 %v1050_v61  ;;  %v859_v5 = vpop.permute.xlu1 %858  ;;  %v1063_v10 = vsub.f32 %v6304_v47, %v6316_v62 }
 0x317   : > { %v875_v12 = vmul.f32 %v859_v5, %v6165_v40  ;;  %5011 = vmatpush3.xpose.msra.mxu0 %v6289_v35  ;;  %5026 = vmatpush3.xpose.msra.mxu1 %v1050_v61  ;;  %v1008_v61 = vsub.f32 %v6334_v18, %v1007_v37  ;;  %v1084_v5 = vsub.f32 %v6338_v20, %v6355_v51 }
 0x318   : > { %5012 = vmatprep.subr.mxu0 %v6276_v29  ;;  %5027 = vmatprep.subr.mxu1 %v1057_v7  ;;  %v1064_v23 = vand.u32 4294901760, %v1063_v10  ;;  %v6343_v27 = vand.u32 4294901760, %v6323_v2  ;;  %v849_v34 = vpop.permute.xlu0 %848 }
 0x319   : > { %1537 = vrot.lane.b32.xlu0 %v875_v12, %s5861_s24  ;;  %v870_v54 = vmul.f32 %v849_v34, %v6170_v44  ;;  %v1009_v10 = vand.u32 4294901760, %v1008_v61  ;;  %v1085_v12 = vand.u32 4294901760, %v1084_v5 }
 0x31a   : > { %v855_v21 = vpop.permute.xlu1 %854  ;;  %v1077_v48 = vsub.f32 %v6323_v2, %v6343_v27 }
 0x31b   : > { %v873_v32 = vmul.f32 %v855_v21, %v6165_v40  ;;  %5013 = vmatpush3.xpose.msra.mxu0 %v6276_v29  ;;  %5028 = vmatpush3.xpose.msra.mxu1 %v1057_v7  ;;  %v874_v7 = vmul.f32 %v6292_v36, %v6170_v44 }
 0x31c   : > { %5014 = vmatprep.subr.mxu0 %v6312_v58  ;;  %5029 = vmatprep.subr.mxu1 %v1064_v23  ;;  %v1078_v3 = vand.u32 4294901760, %v1077_v48 }
 0x31d   : > { %1533 = vrot.lane.b32.xlu1 %v873_v32, %s5861_s24  ;;  %1531 = vrot.lane.b32.xlu0 %v872_v31, %s5861_s24 }
 0x31e   : > { %v851_v42 = vpop.permute.xlu1 %850 }
 0x31f   : > { %v871_v57 = vmul.f32 %v851_v42, %v6165_v40  ;;  %5015 = vmatpush3.xpose.msra.mxu0 %v6312_v58  ;;  %5030 = vmatpush3.xpose.msra.mxu1 %v1064_v23 }
 0x320   : > { %5016 = vmatprep.subr.mxu0 %v6320_v1  ;;  %5031 = vmatprep.subr.mxu1 %v1071_v45 }
 0x321   : > { %1529 = vrot.lane.b32.xlu1 %v871_v57, %s5861_s24  ;;  %1527 = vrot.lane.b32.xlu0 %v870_v54, %s5861_s24  ;;  %v216_v57 = vld [vmem:[#allocation6 + $0x8] sm:$0xff] }
 0x323   : > { %5017 = vmatpush3.xpose.msra.mxu0 %v6320_v1  ;;  %5032 = vmatpush3.xpose.msra.mxu1 %v1071_v45 }
 0x324   : > { %5033 = vmatprep.subr.mxu1 %v1078_v3  ;;  %5040 = vmatprep.subr.mxu0 %v6247_v8 }
 0x325   : > { %1535 = vrot.lane.b32.xlu1 %v874_v7, %s5861_s24 }
 0x326   : > { %5019 = vmatmul.mubr.f32.vlgmr.msra.gmra.mxu0 %v1009_v10 }
 0x327   : > { %5034 = vmatpush3.xpose.msra.mxu1 %v1078_v3  ;;  %5041 = vmatpush3.xpose.msra.mxu0 %v6247_v8  ;;  %v215_v3 = vld [vmem:[#allocation6] sm:$0xff] }
 0x328   : > { %5056 = vmatprep.mubr.f32.mxu0 %v6195_v53  ;;  %5035 = vmatprep.subr.mxu1 %v1085_v12  ;;  %v6449_v53 = vpop.permute.xlu1 %846 }
 0x329   : > { %5042 = vmatprep.subr.mxu0 %v6263_v16 }
 0x32b   : > { %5036 = vmatpush3.xpose.msra.mxu1 %v1085_v12  ;;  %5043 = vmatpush3.xpose.msra.mxu0 %v6263_v16 }
 0x32c   : > { %5044 = vmatprep.subr.mxu0 %v6279_v30  ;;  %5059 = vmatprep.subr.mxu1 %v6243_v4 }
 0x32e   : > { %5038 = vmatmul.mubr.f32.vlgmr.msra.gmra.mxu1 %v6318_v63 }
 0x32f   : > { %5045 = vmatpush3.xpose.msra.mxu0 %v6279_v30  ;;  %5060 = vmatpush3.xpose.msra.mxu1 %v6243_v4 }
 0x330   : > { %5075 = vmatprep.mubr.f32.mxu1 %v997_v56  ;;  %5046 = vmatprep.subr.mxu0 %v6260_v14 }
 0x331   : > { %5061 = vmatprep.subr.mxu1 %v6254_v11 }
 0x333   : > { %5047 = vmatpush3.xpose.msra.mxu0 %v6260_v14  ;;  %5062 = vmatpush3.xpose.msra.mxu1 %v6254_v11 }
 0x334   : > { %5048 = vmatprep.subr.mxu0 %v6304_v47  ;;  %5063 = vmatprep.subr.mxu1 %v6271_v24 }
 0x337   : > { %5049 = vmatpush3.xpose.msra.mxu0 %v6304_v47  ;;  %5064 = vmatpush3.xpose.msra.mxu1 %v6271_v24 }
 0x338   : > { %5050 = vmatprep.subr.mxu0 %v6298_v41  ;;  %5065 = vmatprep.subr.mxu1 %v6249_v9 }
 0x33b   : > { %5051 = vmatpush3.xpose.msra.mxu0 %v6298_v41  ;;  %5066 = vmatpush3.xpose.msra.mxu1 %v6249_v9 }
 0x33c   : > { %5052 = vmatprep.subr.mxu0 %v6323_v2  ;;  %5067 = vmatprep.subr.mxu1 %v6289_v35 }
 0x33f   : > { %5053 = vmatpush3.xpose.msra.mxu0 %v6323_v2  ;;  %5068 = vmatpush3.xpose.msra.mxu1 %v6289_v35 }
 0x340   : > { %5054 = vmatprep.subr.mxu0 %v6338_v20  ;;  %5069 = vmatprep.subr.mxu1 %v6276_v29 }
 0x343   : > { %5055 = vmatpush3.xpose.msra.mxu0 %v6338_v20  ;;  %5070 = vmatpush3.xpose.msra.mxu1 %v6276_v29 }
 0x344   : > { %5071 = vmatprep.subr.mxu1 %v6312_v58  ;;  %5078 = vmatprep.subr.mxu0 %v6257_v13 }
 0x346   : > { %5057 = vmatmul.mubr.f32.vlgmr.msra.gmra.mxu0 %v6334_v18 }
 0x347   : > { %5072 = vmatpush3.xpose.msra.mxu1 %v6312_v58  ;;  %5079 = vmatpush3.xpose.msra.mxu0 %v6257_v13 }
 0x348   : > { %5094 = vmatprep.mubr.f32.mxu0 %v6182_v49  ;;  %5073 = vmatprep.subr.mxu1 %v6320_v1 }
 0x349   : > { %5080 = vmatprep.subr.mxu0 %v6274_v28 }
 0x34b   : > { %5074 = vmatpush3.xpose.msra.mxu1 %v6320_v1  ;;  %5081 = vmatpush3.xpose.msra.mxu0 %v6274_v28 }
 0x34c   : > { %5082 = vmatprep.subr.mxu0 %v6295_v38  ;;  %5097 = vmatprep.subr.mxu1 %v6243_v4 }
 0x34e   : > { %5076 = vmatmul.mubr.f32.vlgmr.msra.gmra.mxu1 %v1007_v37 }
 0x34f   : > { %5083 = vmatpush3.xpose.msra.mxu0 %v6295_v38  ;;  %5098 = vmatpush3.xpose.msra.mxu1 %v6243_v4 }
 0x350   : > { %5113 = vmatprep.mubr.f32.mxu1 %v6182_v49  ;;  %5084 = vmatprep.subr.mxu0 %v6285_v33  ;;  %v6447_v49 = vpop.permute.xlu0 %844 }
 0x351   : > { %5099 = vmatprep.subr.mxu1 %v6254_v11 }
 0x353   : > { %5085 = vmatpush3.xpose.msra.mxu0 %v6285_v33  ;;  %5100 = vmatpush3.xpose.msra.mxu1 %v6254_v11 }
 0x354   : > { %5086 = vmatprep.subr.mxu0 %v6316_v62  ;;  %5101 = vmatprep.subr.mxu1 %v6271_v24 }
 0x357   : > { %5087 = vmatpush3.xpose.msra.mxu0 %v6316_v62  ;;  %5102 = vmatpush3.xpose.msra.mxu1 %v6271_v24 }
 0x358   : > { %5088 = vmatprep.subr.mxu0 %v6328_v6  ;;  %5103 = vmatprep.subr.mxu1 %v6249_v9 }
 0x35b   : > { %5089 = vmatpush3.xpose.msra.mxu0 %v6328_v6  ;;  %5104 = vmatpush3.xpose.msra.mxu1 %v6249_v9 }
 0x35c   : > { %5090 = vmatprep.subr.mxu0 %v6343_v27  ;;  %5105 = vmatprep.subr.mxu1 %v6289_v35 }
 0x35f   : > { %5091 = vmatpush3.xpose.msra.mxu0 %v6343_v27  ;;  %5106 = vmatpush3.xpose.msra.mxu1 %v6289_v35 }
 0x360   : > { %5092 = vmatprep.subr.mxu0 %v6355_v51  ;;  %5107 = vmatprep.subr.mxu1 %v6276_v29 }
 0x363   : > { %5093 = vmatpush3.xpose.msra.mxu0 %v6355_v51  ;;  %5108 = vmatpush3.xpose.msra.mxu1 %v6276_v29 }
 0x364   : > { %5109 = vmatprep.subr.mxu1 %v6312_v58 }
 0x366   : > { %5095 = vmatmul.mubr.f32.vlgmr.msra.gmra.mxu0 %v6318_v63 }
 0x367   : > { %5110 = vmatpush3.xpose.msra.mxu1 %v6312_v58 }
 0x368   : > { %5111 = vmatprep.subr.mxu1 %v6320_v1 }
 0x36b   : > { %5112 = vmatpush3.xpose.msra.mxu1 %v6320_v1 }
 0x36e   : > { %5114 = vmatmul.mubr.f32.vlgmr.msra.gmra.mxu1 %v6318_v63 }
 0x38b   : > { %v1538_v56 = vpop.permute.xlu0 %1537 }
 0x38c   : > { %v6451_v4 = vand.u32 4294901760, %v1538_v56 }
 0x38e   : > { %v6454_v8 = vsub.f32 %v1538_v56, %v6451_v4  ;;  %5116 = vmatprep.subr.mxu0 %v6451_v4 }
 0x38f   : > { %v1534_v9 = vpop.permute.xlu1 %1533  ;;  %5117 = vmatpush3.msra.mxu0 %v6451_v4  ;;  %v1532_v11 = vpop.permute.xlu0 %1531 }
 0x390   : > { %v6459_v13 = vand.u32 4294901760, %v6454_v8  ;;  %v6461_v14 = vand.u32 4294901760, %v1534_v9  ;;  %v6465_v28 = vand.u32 4294901760, %v1532_v11 }
 0x392   : > { %v1666_v16 = vsub.f32 %v6454_v8, %v6459_v13  ;;  %v6468_v33 = vsub.f32 %v1534_v9, %v6461_v14  ;;  %v6473_v38 = vsub.f32 %v1532_v11, %v6465_v28 }
 0x393   : > { %v1530_v24 = vpop.permute.xlu1 %1529  ;;  %v1528_v30 = vpop.permute.xlu0 %1527 }
 0x394   : > { %v1667_v29 = vand.u32 4294901760, %v1666_v16  ;;  %v6470_v35 = vand.u32 4294901760, %v1530_v24  ;;  %v6475_v41 = vand.u32 4294901760, %v1528_v30  ;;  %v6487_v63 = vand.u32 4294901760, %v6468_v33 }
 0x395   : > { %v6498_v6 = vand.u32 4294901760, %v6473_v38 }
 0x396   : > { %5135 = vmatprep.subr.mxu1 %v1667_v29  ;;  %v6480_v58 = vsub.f32 %v1530_v24, %v6470_v35  ;;  %v6491_v1 = vsub.f32 %v1528_v30, %v6475_v41  ;;  %v1680_v20 = vsub.f32 %v6468_v33, %v6487_v63 }
 0x397   : > { %v1536_v36 = vpop.permute.xlu1 %1535  ;;  %5136 = vmatpush3.msra.mxu1 %v1667_v29  ;;  %v1687_v25 = vsub.f32 %v6473_v38, %v6498_v6 }
 0x398   : > { %v6477_v47 = vand.u32 4294901760, %v1536_v36  ;;  %v6507_v21 = vand.u32 4294901760, %v6480_v58  ;;  %v6514_v27 = vand.u32 4294901760, %v6491_v1  ;;  %v1681_v31 = vand.u32 4294901760, %v1680_v20 }
 0x399   : > { %v1688_v34 = vand.u32 4294901760, %v1687_v25 }
 0x39a   : > { %v6483_v62 = vsub.f32 %v1536_v36, %v6477_v47  ;;  %5118 = vmatprep.subr.mxu0 %v6477_v47  ;;  %v1694_v32 = vsub.f32 %v6480_v58, %v6507_v21  ;;  %v1701_v37 = vsub.f32 %v6491_v1, %v6514_v27 }
 0x39b   : > { %5119 = vmatpush3.msra.mxu0 %v6477_v47 }
 0x39c   : > { %5120 = vmatprep.subr.mxu0 %v6461_v14  ;;  %v6495_v2 = vand.u32 4294901760, %v6483_v62  ;;  %v1695_v42 = vand.u32 4294901760, %v1694_v32  ;;  %v1702_v45 = vand.u32 4294901760, %v1701_v37 }
 0x39d   : > { %5121 = vmatpush3.msra.mxu0 %v6461_v14 }
 0x39e   : > { %5122 = vmatprep.subr.mxu0 %v6465_v28  ;;  %v1673_v18 = vsub.f32 %v6483_v62, %v6495_v2 }
 0x39f   : > { %5123 = vmatpush3.msra.mxu0 %v6465_v28 }
 0x3a0   : > { %5124 = vmatprep.subr.mxu0 %v6470_v35  ;;  %v1674_v23 = vand.u32 4294901760, %v1673_v18 }
 0x3a1   : > { %5125 = vmatpush3.msra.mxu0 %v6470_v35 }
 0x3a2   : > { %5126 = vmatprep.subr.mxu0 %v6475_v41  ;;  %5137 = vmatprep.subr.mxu1 %v1674_v23 }
 0x3a3   : > { %5127 = vmatpush3.msra.mxu0 %v6475_v41  ;;  %5138 = vmatpush3.msra.mxu1 %v1674_v23 }
 0x3a4   : > { %5139 = vmatprep.subr.mxu1 %v1681_v31 }
 0x3a5   : > { %5140 = vmatpush3.msra.mxu1 %v1681_v31 }
 0x3a6   : > { %5141 = vmatprep.subr.mxu1 %v1688_v34 }
 0x3a7   : > { %5142 = vmatpush3.msra.mxu1 %v1688_v34 }
 0x3a8   : > { %5143 = vmatprep.subr.mxu1 %v1695_v42 }
 0x3a9   : > { %5144 = vmatpush3.msra.mxu1 %v1695_v42 }
 0x3aa   : > { %5145 = vmatprep.subr.mxu1 %v1702_v45 }
 0x3ab   : > { %5146 = vmatpush3.msra.mxu1 %v1702_v45 }
 0x3e6   : > { %v5020_v48 = vpop.f32.mrf.mxu0 }
 0x3e7   : > { %v1012_v7 = vadd.f32 %v5020_v48, %v216_v57  ;;  %v869_v48 = vmul.f32 %v6449_v53, %v6165_v40 }
 0x3e8   : > { %v1001_v51 = vpop.f32.mrf.mxu0 }
 0x3e9   : > { %v1002_v56 = vadd.f32 %v1001_v51, %v215_v3  ;;  %v868_v51 = vmul.f32 %v6447_v49, %v6170_v44 }
 0x3ee   : > { %v5039_v54 = vpop.f32.mrf.mxu1 }
 0x3ef   : > { %v1129_v9 = vadd.f32 %v5039_v54, %v1012_v7 }
 0x3f0   : > { %v1122_v5 = vpop.f32.mrf.mxu1 }
 0x3f1   : > { %v1123_v16 = vadd.f32 %v1122_v5, %v1002_v56 }
 0x406   : > { %v5058_v61 = vpop.f32.mrf.mxu0 }
 0x407   : > { %v1224_v24 = vadd.f32 %v5058_v61, %v1129_v9 }
 0x408   : > { %v1216_v10 = vpop.f32.mrf.mxu0 }
 0x409   : > { %v1217_v30 = vadd.f32 %v1216_v10, %v1123_v16 }
 0x40e   : > { %v5077_v12 = vpop.f32.mrf.mxu1 }
 0x40f   : > { %v1313_v36 = vadd.f32 %v5077_v12, %v1224_v24 }
 0x410   : > { %v1304_v29 = vpop.f32.mrf.mxu1 }
 0x411   : > { %v1305_v20 = vadd.f32 %v1304_v29, %v1217_v30 }
 0x426   : > { %v5096_v11 = vpop.f32.mrf.mxu0 }
 0x427   : > { %v1414_v23 = vadd.f32 %v5096_v11, %v1313_v36 }
 0x428   : > { %v1407_v18 = vpop.f32.mrf.mxu0 }
 0x429   : > { %v1408_v31 = vadd.f32 %v1407_v18, %v1305_v20 }
 0x42e   : > { %v5115_v25 = vpop.f32.mrf.mxu1 }
 0x42f   : > { %v1499_v32 = vadd.f32 %v5115_v25, %v1414_v23 }
 0x430   : > { %v1492_v34 = vpop.f32.mrf.mxu1 }
 0x431   : > { %v1493_v37 = vadd.f32 %v1492_v34, %v1408_v31  ;;  %v1506_v42 = vsel %vm1502_vm6, %v1499_v32, -inf }
 0x432   : > { %1507 = vmax.xlane.f32.xlu0 %v1506_v42 }
 0x433   : > { %v1503_v45 = vsel %vm1502_vm6, %v1493_v37, -inf }
 0x434   : > { %1504 = vmax.xlane.f32.xlu1 %v1503_v45 }
 0x445   : > { %1525 = vrot.lane.b32.xlu1 %v869_v48, %s5861_s24 }
 0x448   : > { %1523 = vrot.lane.b32.xlu0 %v868_v51, %s5861_s24 }
 0x449   : > { %2147 = vrot.lane.b32.xlu1 %v6163_v39, %s5859_s22 }
 0x44c   : > { %2145 = vrot.lane.b32.xlu0 %v6175_v46, %s5859_s22 }
 0x44d   : > { %2143 = vrot.lane.b32.xlu1 %v6192_v52, %s5859_s22 }
 0x450   : > { %2141 = vrot.lane.b32.xlu0 %v6168_v43, %s5859_s22 }
 0x451   : > { %2139 = vrot.lane.b32.xlu1 %v6211_v60, %s5859_s22 }
 0x454   : > { %2137 = vrot.lane.b32.xlu0 %v6185_v50, %s5859_s22 }
 0x455   : > { %2135 = vrot.lane.b32.xlu1 %v6220_v0, %s5859_s22 }
 0x458   : > { %2133 = vrot.lane.b32.xlu0 %v6201_v55, %s5859_s22 }
 0x459   : > { %2751 = vrot.lane.b32.xlu1 %v6048_v17, %s5860_s21 }
 0x45c   : > { %2749 = vrot.lane.b32.xlu0 %v6054_v19, %s5860_s21 }
 0x45d   : > { %2747 = vrot.lane.b32.xlu1 %v6065_v22, %s5860_s21 }
 0x460   : > { %2745 = vrot.lane.b32.xlu0 %v6080_v26, %s5860_s21 }
 0x461   : > { %3294 = vrot.lane.b32.xlu1 %v6158_v15, %s5860_s21 }
 0x4bb   : > { %v1508_v39 = vpop.xlane.xlu0 %1507 }
 0x4bc   : > { %v1510_v40 = vsub.f32 %v1499_v32, %v1508_v39 }
 0x4bd   : > { %v1505_v43 = vpop.xlane.xlu1 %1504 }
 0x4be   : > { %v1513_v44 = vmul.f32 1.442695, %v1510_v40  ;;  %v1509_v46 = vsub.f32 %v1493_v37, %v1505_v43 }
 0x4bf   : > { %v1524_v50 = vpop.permute.xlu0 %1523 }
 0x4c0   : > { %5675 = vpow2.f32 %v1513_v44  ;;  %v1511_v17 = vmul.f32 1.442695, %v1509_v46  ;;  %v6557_v52 = vand.u32 4294901760, %v1524_v50 }
 0x4c1   : > { %v1526_v19 = vpop.permute.xlu1 %1525 }
 0x4c2   : > { %5677 = vpow2.f32 %v1511_v17  ;;  %v6560_v22 = vsub.f32 %v1524_v50, %v6557_v52  ;;  %v6562_v55 = vand.u32 4294901760, %v1526_v19 }
 0x4c3   : > { %v2146_v18 = vpop.permute.xlu0 %2145 }
 0x4c4   : > { %v6565_v26 = vsub.f32 %v1526_v19, %v6562_v55  ;;  %5128 = vmatprep.subr.mxu0 %v6562_v55  ;;  %v6569_v15 = vand.u32 4294901760, %v6560_v22 }
 0x4c5   : > { %5129 = vmatpush3.msra.mxu0 %v6562_v55  ;;  %v2148_v36 = vpop.permute.xlu1 %2147 }
 0x4c6   : > { %5130 = vmatprep.subr.mxu0 %v6557_v52  ;;  %v6574_v60 = vand.u32 4294901760, %v6565_v26  ;;  %v1715_v49 = vsub.f32 %v6560_v22, %v6569_v15  ;;  %v6636_v20 = vand.u32 4294901760, %v2148_v36 }
 0x4c7   : > { %5131 = vmatpush3.msra.mxu0 %v6557_v52 }
 0x4c8   : > { %5154 = vmatprep.subr.mxu0 %v6454_v8  ;;  %v1708_v0 = vsub.f32 %v6565_v26, %v6574_v60  ;;  %v1716_v54 = vand.u32 4294901760, %v1715_v49 }
 0x4ca   : > { %v1709_v53 = vand.u32 4294901760, %v1708_v0 }
 0x4cc   : > { %5147 = vmatprep.subr.mxu1 %v1709_v53 }
 0x4cd   : > { %v5676_v57 = vpop.eup %5675  ;;  %5148 = vmatpush3.msra.mxu1 %v1709_v53 }
 0x4ce   : > { %v1551_v61 = vsel %vm1502_vm6, %v5676_v57, 0  ;;  %5149 = vmatprep.subr.mxu1 %v1716_v54 }
 0x4cf   : > { %v5678_v3 = vpop.eup %5677  ;;  %v6583_v5 = vand.u32 4294901760, %v1551_v61  ;;  %5150 = vmatpush3.msra.mxu1 %v1716_v54 }
 0x4d0   : > { %v1548_v7 = vsel %vm1502_vm6, %v5678_v3, 0  ;;  %5173 = vmatprep.subr.mxu1 %v6451_v4 }
 0x4d1   : > { %v6587_v10 = vand.u32 4294901760, %v1548_v7  ;;  %v6590_v12 = vsub.f32 %v1551_v61, %v6583_v5 }
 0x4d3   : > { %5151 = vmatprep.mubr.f32.mxu1 %v6587_v10  ;;  %v6594_v56 = vsub.f32 %v1548_v7, %v6587_v10  ;;  %v6597_v9 = vand.u32 4294901760, %v6590_v12 }
 0x4d4   : > { %5152 = vmatmul.mubr.f32.vlgmr.msra.gmra.mxu1 %v6583_v5 }
 0x4d5   : > { %5174 = vmatpush3.msra.mxu1 %v6451_v4  ;;  %v6602_v11 = vand.u32 4294901760, %v6594_v56  ;;  %v1639_v16 = vsub.f32 %v6590_v12, %v6597_v9 }
 0x4d6   : > { %5175 = vmatprep.subr.mxu1 %v6477_v47 }
 0x4d7   : > { %5176 = vmatpush3.msra.mxu1 %v6477_v47  ;;  %5189 = vmatprep.mubr.f32.mxu1 %v6602_v11  ;;  %v1629_v24 = vsub.f32 %v6594_v56, %v6602_v11  ;;  %v6616_v30 = vand.u32 4294901760, %v1639_v16 }
 0x4d8   : > { %5177 = vmatprep.subr.mxu1 %v6461_v14 }
 0x4d9   : > { %5178 = vmatpush3.msra.mxu1 %v6461_v14  ;;  %v6613_v29 = vand.u32 4294901760, %v1629_v24 }
 0x4da   : > { %5179 = vmatprep.subr.mxu1 %v6465_v28 }
 0x4db   : > { %5180 = vmatpush3.msra.mxu1 %v6465_v28  ;;  %5132 = vmatprep.mubr.f32.mxu0 %v6613_v29 }
 0x4dc   : > { %5181 = vmatprep.subr.mxu1 %v6470_v35  ;;  %5133 = vmatmul.mubr.f32.vlgmr.msra.gmra.mxu0 %v6616_v30 }
 0x4dd   : > { %5155 = vmatpush3.msra.mxu0 %v6454_v8  ;;  %5182 = vmatpush3.msra.mxu1 %v6470_v35  ;;  %v2144_v8 = vpop.permute.xlu1 %2143 }
 0x4de   : > { %5156 = vmatprep.subr.mxu0 %v6483_v62  ;;  %5170 = vmatprep.mubr.f32.mxu0 %v6594_v56  ;;  %v6653_v23 = vand.u32 4294901760, %v2144_v8 }
 0x4df   : > { %5183 = vmatprep.subr.mxu1 %v6475_v41  ;;  %5157 = vmatpush3.msra.mxu0 %v6483_v62  ;;  %v2142_v62 = vpop.permute.xlu0 %2141 }
 0x4e0   : > { %5184 = vmatpush3.msra.mxu1 %v6475_v41  ;;  %5158 = vmatprep.subr.mxu0 %v6468_v33 }
 0x4e1   : > { %5185 = vmatprep.subr.mxu1 %v6562_v55  ;;  %5159 = vmatpush3.msra.mxu0 %v6468_v33  ;;  %v6644_v33 = vand.u32 4294901760, %v2146_v18  ;;  %v2140_v25 = vpop.permute.xlu1 %2139 }
 0x4e2   : > { %5186 = vmatpush3.msra.mxu1 %v6562_v55  ;;  %5160 = vmatprep.subr.mxu0 %v6473_v38  ;;  %v6674_v32 = vand.u32 4294901760, %v2140_v25 }
 0x4e3   : > { %5187 = vmatprep.subr.mxu1 %v6557_v52  ;;  %5161 = vmatpush3.msra.mxu0 %v6473_v38  ;;  %v6649_v38 = vsub.f32 %v2148_v36, %v6636_v20  ;;  %v2138_v31 = vpop.permute.xlu0 %2137 }
 0x4e4   : > { %5188 = vmatpush3.msra.mxu1 %v6557_v52  ;;  %5162 = vmatprep.subr.mxu0 %v6480_v58  ;;  %v6688_v42 = vand.u32 4294901760, %v2138_v31  ;;  %v6695_v45 = vsub.f32 %v2140_v25, %v6674_v32 }
 0x4e5   : > { %5190 = vmatmul.mubr.f32.vlgmr.msra.gmra.mxu1 %v6597_v9  ;;  %5211 = vmatprep.subr.mxu1 %v6451_v4  ;;  %v2136_v34 = vpop.permute.xlu1 %2135 }
 0x4e6   : > { %5163 = vmatpush3.msra.mxu0 %v6480_v58  ;;  %5212 = vmatpush3.msra.mxu1 %v6451_v4  ;;  %v6660_v4 = vsub.f32 %v2146_v18, %v6644_v33  ;;  %v6662_v58 = vand.u32 4294901760, %v2142_v62  ;;  %v6714_v40 = vsub.f32 %v2138_v31, %v6688_v42  ;;  %v6723_v44 = vand.u32 4294901760, %v6695_v45 }
 0x4e7   : > { %5227 = vmatprep.mubr.f32.mxu1 %v6587_v10  ;;  %5164 = vmatprep.subr.mxu0 %v6491_v1  ;;  %v2134_v48 = vpop.permute.xlu0 %2133 }
 0x4e8   : > { %5213 = vmatprep.subr.mxu1 %v6477_v47  ;;  %5165 = vmatpush3.msra.mxu0 %v6491_v1  ;;  %v6667_v1 = vand.u32 4294901760, %v6649_v38  ;;  %v6684_v37 = vand.u32 4294901760, %v6660_v4  ;;  %v6716_v43 = vand.u32 4294901760, %v2134_v48  ;;  %v6739_v19 = vand.u32 4294901760, %v6714_v40 }
 0x4e9   : > { %5214 = vmatpush3.msra.mxu1 %v6477_v47  ;;  %5166 = vmatprep.subr.mxu0 %v6565_v26  ;;  %v6672_v47 = vsub.f32 %v2144_v8, %v6653_v23  ;;  %v2752_v54 = vpop.permute.xlu1 %2751 }
 0x4ea   : > { %5215 = vmatprep.subr.mxu1 %v6461_v14  ;;  %5167 = vmatpush3.msra.mxu0 %v6565_v26  ;;  %v6736_v17 = vsub.f32 %v2134_v48, %v6716_v43  ;;  %v6855_v57 = vand.u32 4294901760, %v2752_v54 }
 0x4eb   : > { %5216 = vmatpush3.msra.mxu1 %v6461_v14  ;;  %5168 = vmatprep.subr.mxu0 %v6560_v22  ;;  %v6681_v14 = vsub.f32 %v2142_v62, %v6662_v58  ;;  %v6698_v51 = vand.u32 4294901760, %v6672_v47  ;;  %v2750_v61 = vpop.permute.xlu0 %2749 }
 0x4ec   : > { %5217 = vmatprep.subr.mxu1 %v6465_v28  ;;  %5169 = vmatpush3.msra.mxu0 %v6560_v22  ;;  %v6754_v26 = vand.u32 4294901760, %v6736_v17  ;;  %v6858_v3 = vsub.f32 %v2752_v54, %v6855_v57  ;;  %v6860_v7 = vand.u32 4294901760, %v2750_v61 }
 0x4ed   : > { %5218 = vmatpush3.msra.mxu1 %v6465_v28  ;;  %5171 = vmatmul.mubr.f32.vlgmr.msra.gmra.mxu0 %v6590_v12  ;;  %v2270_v28 = vsub.f32 %v6649_v38, %v6667_v1  ;;  %v6709_v39 = vand.u32 4294901760, %v6681_v14 }
 0x4ee   : > { %5192 = vmatprep.subr.mxu0 %v6459_v13  ;;  %5219 = vmatprep.subr.mxu1 %v6470_v35  ;;  %v2319_v53 = vsub.f32 %v6736_v17, %v6754_v26 }
 0x4ef   : > { %5193 = vmatpush3.msra.mxu0 %v6459_v13  ;;  %5208 = vmatprep.mubr.f32.mxu0 %v6587_v10  ;;  %v6702_v13 = vand.u32 4294901760, %v2136_v34  ;;  %v2291_v50 = vsub.f32 %v6681_v14, %v6709_v39 }
 0x4f0   : > { %5220 = vmatpush3.msra.mxu1 %v6470_v35  ;;  %5194 = vmatprep.subr.mxu0 %v6495_v2  ;;  %v2277_v35 = vsub.f32 %v6660_v4, %v6684_v37 }
 0x4f1   : > { %5221 = vmatprep.subr.mxu1 %v6475_v41  ;;  %5195 = vmatpush3.msra.mxu0 %v6495_v2  ;;  %v2271_v2 = vand.u32 4294901760, %v2270_v28 }
 0x4f2   : > { %5222 = vmatpush3.msra.mxu1 %v6475_v41  ;;  %5196 = vmatprep.subr.mxu0 %v6487_v63  ;;  %v2284_v41 = vsub.f32 %v6672_v47, %v6698_v51  ;;  %v2278_v46 = vand.u32 4294901760, %v2277_v35 }
 0x4f3   : > { %5223 = vmatprep.subr.mxu1 %v6562_v55  ;;  %5197 = vmatpush3.msra.mxu0 %v6487_v63  ;;  %v6728_v63 = vsub.f32 %v2136_v34, %v6702_v13 }
 0x4f4   : > { %5224 = vmatpush3.msra.mxu1 %v6562_v55  ;;  %5198 = vmatprep.subr.mxu0 %v6498_v6  ;;  %v2292_v55 = vand.u32 4294901760, %v2291_v50 }
 0x4f5   : > { %5225 = vmatprep.subr.mxu1 %v6557_v52  ;;  %5199 = vmatpush3.msra.mxu0 %v6498_v6  ;;  %v2285_v6 = vand.u32 4294901760, %v2284_v41  ;;  %v6747_v22 = vand.u32 4294901760, %v6728_v63 }
 0x4f6   : > { %5226 = vmatpush3.msra.mxu1 %v6557_v52  ;;  %5200 = vmatprep.subr.mxu0 %v6507_v21  ;;  %v2298_v52 = vsub.f32 %v6695_v45, %v6723_v44 }
 0x4f7   : > { %5228 = vmatmul.mubr.f32.vlgmr.msra.gmra.mxu1 %v6583_v5  ;;  %5249 = vmatprep.subr.mxu1 %v2271_v2 }
 0x4f8   : > { %5201 = vmatpush3.msra.mxu0 %v6507_v21  ;;  %5250 = vmatpush3.msra.mxu1 %v2271_v2  ;;  %v2305_v21 = vsub.f32 %v6714_v40, %v6739_v19  ;;  %v2299_v0 = vand.u32 4294901760, %v2298_v52 }
 0x4f9   : > { %5265 = vmatprep.mubr.f32.mxu1 %v6587_v10  ;;  %5202 = vmatprep.subr.mxu0 %v6514_v27 }
 0x4fa   : > { %5251 = vmatprep.subr.mxu1 %v2278_v46  ;;  %5203 = vmatpush3.msra.mxu0 %v6514_v27  ;;  %v2312_v27 = vsub.f32 %v6728_v63, %v6747_v22  ;;  %v2306_v49 = vand.u32 4294901760, %v2305_v21 }
 0x4fb   : > { %5252 = vmatpush3.msra.mxu1 %v2278_v46  ;;  %5204 = vmatprep.subr.mxu0 %v6574_v60 }
 0x4fc   : > { %5253 = vmatprep.subr.mxu1 %v2285_v6  ;;  %5205 = vmatpush3.msra.mxu0 %v6574_v60  ;;  %v2313_v60 = vand.u32 4294901760, %v2312_v27 }
 0x4fd   : > { %5254 = vmatpush3.msra.mxu1 %v2285_v6  ;;  %5206 = vmatprep.subr.mxu0 %v6569_v15 }
 0x4fe   : > { %5255 = vmatprep.subr.mxu1 %v2292_v55  ;;  %5207 = vmatpush3.msra.mxu0 %v6569_v15  ;;  %v2320_v15 = vand.u32 4294901760, %v2319_v53 }
 0x4ff   : > { %5256 = vmatpush3.msra.mxu1 %v2292_v55  ;;  %5209 = vmatmul.mubr.f32.vlgmr.msra.gmra.mxu0 %v6583_v5 }
 0x500   : > { %5230 = vmatprep.subr.mxu0 %v6636_v20  ;;  %5257 = vmatprep.subr.mxu1 %v2299_v0 }
 0x501   : > { %5231 = vmatpush3.msra.mxu0 %v6636_v20  ;;  %5246 = vmatprep.mubr.f32.mxu0 %v6613_v29 }
 0x502   : > { %5258 = vmatpush3.msra.mxu1 %v2299_v0  ;;  %5232 = vmatprep.subr.mxu0 %v6644_v33 }
 0x503   : > { %5259 = vmatprep.subr.mxu1 %v2306_v49  ;;  %5233 = vmatpush3.msra.mxu0 %v6644_v33 }
 0x504   : > { %5260 = vmatpush3.msra.mxu1 %v2306_v49  ;;  %5234 = vmatprep.subr.mxu0 %v6653_v23 }
 0x505   : > { %5261 = vmatprep.subr.mxu1 %v2313_v60  ;;  %5235 = vmatpush3.msra.mxu0 %v6653_v23 }
 0x506   : > { %5262 = vmatpush3.msra.mxu1 %v2313_v60  ;;  %5236 = vmatprep.subr.mxu0 %v6662_v58 }
 0x507   : > { %5263 = vmatprep.subr.mxu1 %v2320_v15  ;;  %5237 = vmatpush3.msra.mxu0 %v6662_v58 }
 0x508   : > { %5264 = vmatpush3.msra.mxu1 %v2320_v15  ;;  %5238 = vmatprep.subr.mxu0 %v6674_v32 }
 0x509   : > { %5266 = vmatmul.mubr.f32.vlgmr.msra.gmra.mxu1 %v6583_v5  ;;  %5287 = vmatprep.subr.mxu1 %v6636_v20 }
 0x50a   : > { %5239 = vmatpush3.msra.mxu0 %v6674_v32  ;;  %5288 = vmatpush3.msra.mxu1 %v6636_v20 }
 0x50b   : > { %5303 = vmatprep.mubr.f32.mxu1 %v6602_v11  ;;  %5240 = vmatprep.subr.mxu0 %v6688_v42 }
 0x50c   : > { %5289 = vmatprep.subr.mxu1 %v6644_v33  ;;  %5241 = vmatpush3.msra.mxu0 %v6688_v42 }
 0x50d   : > { %5290 = vmatpush3.msra.mxu1 %v6644_v33  ;;  %5242 = vmatprep.subr.mxu0 %v6702_v13 }
 0x50e   : > { %5291 = vmatprep.subr.mxu1 %v6653_v23  ;;  %5243 = vmatpush3.msra.mxu0 %v6702_v13 }
 0x50f   : > { %5292 = vmatpush3.msra.mxu1 %v6653_v23  ;;  %5244 = vmatprep.subr.mxu0 %v6716_v43 }
 0x510   : > { %5293 = vmatprep.subr.mxu1 %v6662_v58  ;;  %5245 = vmatpush3.msra.mxu0 %v6716_v43 }
 0x511   : > { %5294 = vmatpush3.msra.mxu1 %v6662_v58  ;;  %5247 = vmatmul.mubr.f32.vlgmr.msra.gmra.mxu0 %v6616_v30 }
 0x512   : > { %5268 = vmatprep.subr.mxu0 %v6649_v38  ;;  %5295 = vmatprep.subr.mxu1 %v6674_v32 }
 0x513   : > { %5269 = vmatpush3.msra.mxu0 %v6649_v38  ;;  %5284 = vmatprep.mubr.f32.mxu0 %v6594_v56 }
 0x514   : > { %5296 = vmatpush3.msra.mxu1 %v6674_v32  ;;  %5270 = vmatprep.subr.mxu0 %v6660_v4 }
 0x515   : > { %5297 = vmatprep.subr.mxu1 %v6688_v42  ;;  %5271 = vmatpush3.msra.mxu0 %v6660_v4 }
 0x516   : > { %5298 = vmatpush3.msra.mxu1 %v6688_v42  ;;  %5272 = vmatprep.subr.mxu0 %v6672_v47 }
 0x517   : > { %5299 = vmatprep.subr.mxu1 %v6702_v13  ;;  %5273 = vmatpush3.msra.mxu0 %v6672_v47 }
 0x518   : > { %5300 = vmatpush3.msra.mxu1 %v6702_v13  ;;  %5274 = vmatprep.subr.mxu0 %v6681_v14 }
 0x519   : > { %5301 = vmatprep.subr.mxu1 %v6716_v43  ;;  %5275 = vmatpush3.msra.mxu0 %v6681_v14 }
 0x51a   : > { %5302 = vmatpush3.msra.mxu1 %v6716_v43  ;;  %5276 = vmatprep.subr.mxu0 %v6695_v45 }
 0x51b   : > { %5304 = vmatmul.mubr.f32.vlgmr.msra.gmra.mxu1 %v6597_v9  ;;  %5325 = vmatprep.subr.mxu1 %v6636_v20  ;;  %v2746_v9 = vpop.permute.xlu0 %2745 }
 0x51c   : > { %5277 = vmatpush3.msra.mxu0 %v6695_v45  ;;  %5326 = vmatpush3.msra.mxu1 %v6636_v20  ;;  %v6877_v16 = vand.u32 4294901760, %v2746_v9 }
 0x51d   : > { %5341 = vmatprep.mubr.f32.mxu1 %v6587_v10  ;;  %5278 = vmatprep.subr.mxu0 %v6714_v40 }
 0x51e   : > { %5327 = vmatprep.subr.mxu1 %v6644_v33  ;;  %5279 = vmatpush3.msra.mxu0 %v6714_v40  ;;  %v6887_v30 = vsub.f32 %v2746_v9, %v6877_v16 }
 0x51f   : > { %5328 = vmatpush3.msra.mxu1 %v6644_v33  ;;  %5280 = vmatprep.subr.mxu0 %v6728_v63 }
 0x520   : > { %5329 = vmatprep.subr.mxu1 %v6653_v23  ;;  %5281 = vmatpush3.msra.mxu0 %v6728_v63  ;;  %v6899_v33 = vand.u32 4294901760, %v6887_v30 }
 0x521   : > { %5330 = vmatpush3.msra.mxu1 %v6653_v23  ;;  %5282 = vmatprep.subr.mxu0 %v6736_v17 }
 0x522   : > { %5331 = vmatprep.subr.mxu1 %v6662_v58  ;;  %5283 = vmatpush3.msra.mxu0 %v6736_v17  ;;  %v2901_v23 = vsub.f32 %v6887_v30, %v6899_v33 }
 0x523   : > { %5332 = vmatpush3.msra.mxu1 %v6662_v58  ;;  %5285 = vmatmul.mubr.f32.vlgmr.msra.gmra.mxu0 %v6590_v12  ;;  %v6865_v12 = vsub.f32 %v2750_v61, %v6860_v7 }
 0x524   : > { %5306 = vmatprep.subr.mxu0 %v6667_v1  ;;  %5333 = vmatprep.subr.mxu1 %v6674_v32  ;;  %v2902_v25 = vand.u32 4294901760, %v2901_v23 }
 0x525   : > { %5307 = vmatpush3.msra.mxu0 %v6667_v1  ;;  %5322 = vmatprep.mubr.f32.mxu0 %v6587_v10  ;;  %v2748_v10 = vpop.permute.xlu1 %2747  ;;  %v6882_v29 = vand.u32 4294901760, %v6865_v12 }
 0x526   : > { %5334 = vmatpush3.msra.mxu1 %v6674_v32  ;;  %5308 = vmatprep.subr.mxu0 %v6684_v37  ;;  %v6867_v56 = vand.u32 4294901760, %v2748_v10 }
 0x527   : > { %5335 = vmatprep.subr.mxu1 %v6688_v42  ;;  %5309 = vmatpush3.msra.mxu0 %v6684_v37  ;;  %v2887_v18 = vsub.f32 %v6865_v12, %v6882_v29 }
 0x528   : > { %5336 = vmatpush3.msra.mxu1 %v6688_v42  ;;  %5310 = vmatprep.subr.mxu0 %v6698_v51  ;;  %v6875_v11 = vsub.f32 %v2748_v10, %v6867_v56 }
 0x529   : > { %5337 = vmatprep.subr.mxu1 %v6702_v13  ;;  %5311 = vmatpush3.msra.mxu0 %v6698_v51  ;;  %v2888_v20 = vand.u32 4294901760, %v2887_v18 }
 0x52a   : > { %5338 = vmatpush3.msra.mxu1 %v6702_v13  ;;  %5312 = vmatprep.subr.mxu0 %v6709_v39  ;;  %v6892_v8 = vand.u32 4294901760, %v6875_v11 }
 0x52b   : > { %5339 = vmatprep.subr.mxu1 %v6716_v43  ;;  %5313 = vmatpush3.msra.mxu0 %v6709_v39 }
 0x52c   : > { %5340 = vmatpush3.msra.mxu1 %v6716_v43  ;;  %5314 = vmatprep.subr.mxu0 %v6723_v44  ;;  %v2894_v62 = vsub.f32 %v6875_v11, %v6892_v8 }
 0x52d   : > { %5342 = vmatmul.mubr.f32.vlgmr.msra.gmra.mxu1 %v6583_v5  ;;  %5315 = vmatpush3.msra.mxu0 %v6723_v44 }
 0x52e   : > { %5316 = vmatprep.subr.mxu0 %v6739_v19  ;;  %v2895_v38 = vand.u32 4294901760, %v2894_v62 }
 0x52f   : > { %5317 = vmatpush3.msra.mxu0 %v6739_v19 }
 0x530   : > { %5318 = vmatprep.subr.mxu0 %v6747_v22 }
 0x531   : > { %5319 = vmatpush3.msra.mxu0 %v6747_v22 }
 0x532   : > { %5320 = vmatprep.subr.mxu0 %v6754_v26 }
 0x533   : > { %5321 = vmatpush3.msra.mxu0 %v6754_v26 }
 0x534   : > { %5323 = vmatmul.mubr.f32.vlgmr.msra.gmra.mxu0 %v6583_v5  ;;  %5344 = vmatprep.subr.mxu0 %v6855_v57  ;;  %v6870_v5 = vand.u32 4294901760, %v6858_v3 }
 0x535   : > { %5345 = vmatpush3.msra.mxu0 %v6855_v57 }
 0x536   : > { %5346 = vmatprep.subr.mxu0 %v6860_v7  ;;  %v2880_v24 = vsub.f32 %v6858_v3, %v6870_v5 }
 0x537   : > { %5347 = vmatpush3.msra.mxu0 %v6860_v7 }
 0x538   : > { %5348 = vmatprep.subr.mxu0 %v6867_v56  ;;  %v2881_v36 = vand.u32 4294901760, %v2880_v24 }
 0x539   : > { %5349 = vmatpush3.msra.mxu0 %v6867_v56 }
 0x53a   : > { %5350 = vmatprep.subr.mxu0 %v6877_v16  ;;  %5355 = vmatprep.subr.mxu1 %v2881_v36 }
 0x53b   : > { %5351 = vmatpush3.msra.mxu0 %v6877_v16  ;;  %5356 = vmatpush3.msra.mxu1 %v2881_v36 }
 0x53c   : > { %5366 = vmatprep.subr.mxu0 %v6858_v3  ;;  %5357 = vmatprep.subr.mxu1 %v2888_v20 }
 0x53d   : > { %5358 = vmatpush3.msra.mxu1 %v2888_v20 }
 0x53e   : > { %5359 = vmatprep.subr.mxu1 %v2895_v38 }
 0x53f   : > { %5360 = vmatpush3.msra.mxu1 %v2895_v38 }
 0x540   : > { %5361 = vmatprep.subr.mxu1 %v2902_v25 }
 0x541   : > { %5362 = vmatpush3.msra.mxu1 %v2902_v25 }
 0x542   : > { %5377 = vmatprep.subr.mxu1 %v6855_v57 }
 0x594   : > { %v5153_v58 = vpop.f32.mrf.mxu1 }
 0x596   : > { %v1753_v47 = vpop.f32.mrf.mxu1 }
 0x59c   : > { %v5134_v4 = vpop.f32.mrf.mxu0 }
 0x59d   : > { %v1760_v0 = vadd.f32 %v5153_v58, %v5134_v4 }
 0x59e   : > { %v1632_v31 = vpop.f32.mrf.mxu0 }
 0x59f   : > { %v1754_v49 = vadd.f32 %v1753_v47, %v1632_v31 }
 0x5a5   : > { %v5191_v32 = vpop.f32.mrf.mxu1 }
 0x5a7   : > { %v1935_v37 = vpop.f32.mrf.mxu1 }
 0x5ad   : > { %v5172_v1 = vpop.f32.mrf.mxu0 }
 0x5ae   : > { %v1855_v53 = vadd.f32 %v5172_v1, %v1760_v0 }
 0x5af   : > { %v1847_v14 = vpop.f32.mrf.mxu0 }
 0x5b0   : > { %v1848_v60 = vadd.f32 %v1847_v14, %v1754_v49  ;;  %v1944_v15 = vadd.f32 %v5191_v32, %v1855_v53 }
 0x5b2   : > { %v1936_v61 = vadd.f32 %v1935_v37, %v1848_v60 }
 0x5b7   : > { %v5229_v42 = vpop.f32.mrf.mxu1 }
 0x5b9   : > { %v2123_v48 = vpop.f32.mrf.mxu1 }
 0x5bf   : > { %v5210_v34 = vpop.f32.mrf.mxu0 }
 0x5c0   : > { %v2045_v54 = vadd.f32 %v5210_v34, %v1944_v15  ;;  %v224_v15 = vld [vmem:[%s6022_s19 + $0x38] sm:$0xff] }
 0x5c1   : > { %v2038_v28 = vpop.f32.mrf.mxu0 }
 0x5c2   : > { %v2039_v10 = vadd.f32 %v2038_v28, %v1936_v61  ;;  %v2130_v9 = vadd.f32 %v5229_v42, %v2045_v54  ;;  %v6952_v54 = vand.u32 4294901760, %v224_v15 }
 0x5c4   : > { %v2124_v36 = vadd.f32 %v2123_v48, %v2039_v10  ;;  %v6955_v61 = vsub.f32 %v224_v15, %v6952_v54 }
 0x5c6   : > { %v6960_v10 = vand.u32 4294901760, %v6955_v61 }
 0x5c9   : > { %v5267_v51 = vpop.f32.mrf.mxu1 }
 0x5cb   : > { %v2357_v39 = vpop.f32.mrf.mxu1 }
 0x5d1   : > { %v5248_v45 = vpop.f32.mrf.mxu0 }
 0x5d2   : > { %v2364_v40 = vadd.f32 %v5267_v51, %v5248_v45 }
 0x5d3   : > { %v2236_v13 = vpop.f32.mrf.mxu0 }
 0x5d4   : > { %v2358_v41 = vadd.f32 %v2357_v39, %v2236_v13 }
 0x5db   : > { %v5305_v2 = vpop.f32.mrf.mxu1 }
 0x5dd   : > { %v2539_v46 = vpop.f32.mrf.mxu1 }
 0x5e3   : > { %v5286_v35 = vpop.f32.mrf.mxu0 }
 0x5e4   : > { %v2459_v44 = vadd.f32 %v5286_v35, %v2364_v40 }
 0x5e5   : > { %v2451_v43 = vpop.f32.mrf.mxu0 }
 0x5e6   : > { %v2452_v63 = vadd.f32 %v2451_v43, %v2358_v41  ;;  %v2548_v50 = vadd.f32 %v5305_v2, %v2459_v44  ;;  %v3295_v2 = vpop.permute.xlu1 %3294  ;;  %v5691_v41 = vld [vmem:[#allocation2 + $0x8] sm:$0xff] }
 0x5e8   : > { %v2540_v52 = vadd.f32 %v2539_v46, %v2452_v63  ;;  %v5692_v63 = vld [vmem:[#allocation2] sm:$0xff] }
 0x5ed   : > { %v5343_v17 = vpop.f32.mrf.mxu1 }
 0x5ef   : > { %v2727_v26 = vpop.f32.mrf.mxu1 }
 0x5f4   : > { %v5324_v19 = vpop.f32.mrf.mxu0 }
 0x5f5   : > { %v2649_v6 = vadd.f32 %v5324_v19, %v2548_v50 }
 0x5f6   : > { %v2642_v22 = vpop.f32.mrf.mxu0 }
 0x5f7   : > { %v2734_v55 = vadd.f32 %v5343_v17, %v2649_v6  ;;  %v2643_v21 = vadd.f32 %v2642_v22, %v2540_v52 }
 0x5f9   : > { %5679 = vrcp.f32 %v2734_v55  ;;  %v2728_v27 = vadd.f32 %v2727_v26, %v2643_v21 }
 0x5fb   : > { %5681 = vrcp.f32 %v2728_v27 }
 0x606   : > { %v5680_v24 = vpop.eup %5679 }
 0x607   : > { %v2740_v18 = vmul.f32 %v5680_v24, %v2130_v9  ;;  %v3482_v9 = vsub.f32 %v6955_v61, %v6960_v10 }
 0x608   : > { %v5682_v20 = vpop.eup %5681 }
 0x609   : > { %v2738_v62 = vmul.f32 %v5682_v20, %v2124_v36  ;;  %v2761_v38 = vsel %vm236_vm1, %v2740_v18, 0  ;;  %v3483_v24 = vand.u32 4294901760, %v3482_v9 }
 0x60a   : > { %v2842_v23 = vand.u32 4294901760, %v2761_v38 }
 0x60b   : > { %v2758_v25 = vsel %vm236_vm1, %v2738_v62, 0 }
 0x60c   : > { %v2832_v4 = vand.u32 4294901760, %v2758_v25  ;;  %v2843_v58 = vsub.f32 %v2761_v38, %v2842_v23 }
 0x60e   : > { %5363 = vmatprep.mubr.f32.mxu1 %v2832_v4  ;;  %v2833_v31 = vsub.f32 %v2758_v25, %v2832_v4  ;;  %v2844_v1 = vand.u32 4294901760, %v2843_v58  ;;  %v223_v25 = vld [vmem:[%s6022_s19 + $0x30] sm:$0xff] }
 0x60f   : > { %5364 = vmatmul.mubr.f32.vlgmr.msra.gmra.mxu1 %v2842_v23 }
 0x610   : > { %5378 = vmatpush3.msra.mxu1 %v6855_v57  ;;  %v2834_v47 = vand.u32 4294901760, %v2833_v31  ;;  %v2845_v14 = vsub.f32 %v2843_v58, %v2844_v1 }
 0x611   : > { %5379 = vmatprep.subr.mxu1 %v6860_v7 }
 0x612   : > { %5380 = vmatpush3.msra.mxu1 %v6860_v7  ;;  %5385 = vmatprep.mubr.f32.mxu1 %v2834_v47  ;;  %v2835_v32 = vsub.f32 %v2833_v31, %v2834_v47  ;;  %v2846_v37 = vand.u32 4294901760, %v2845_v14 }
 0x613   : > { %5381 = vmatprep.subr.mxu1 %v6867_v56 }
 0x614   : > { %5382 = vmatpush3.msra.mxu1 %v6867_v56  ;;  %v2836_v34 = vand.u32 4294901760, %v2835_v32 }
 0x615   : > { %5383 = vmatprep.subr.mxu1 %v6877_v16 }
 0x616   : > { %5384 = vmatpush3.msra.mxu1 %v6877_v16  ;;  %5352 = vmatprep.mubr.f32.mxu0 %v2836_v34 }
 0x617   : > { %5386 = vmatmul.mubr.f32.vlgmr.msra.gmra.mxu1 %v2844_v1  ;;  %5399 = vmatprep.subr.mxu1 %v6855_v57  ;;  %v222_v1 = vld [vmem:[%s6022_s19 + $0x28] sm:$0xff] }
 0x618   : > { %5353 = vmatmul.mubr.f32.vlgmr.msra.gmra.mxu0 %v2846_v37  ;;  %5400 = vmatpush3.msra.mxu1 %v6855_v57  ;;  %v6971_v34 = vand.u32 4294901760, %v222_v1 }
 0x619   : > { %5367 = vmatpush3.msra.mxu0 %v6858_v3  ;;  %5407 = vmatprep.mubr.f32.mxu1 %v2832_v4 }
 0x61a   : > { %5368 = vmatprep.subr.mxu0 %v6865_v12  ;;  %5374 = vmatprep.mubr.f32.mxu0 %v2833_v31 }
 0x61b   : > { %5401 = vmatprep.subr.mxu1 %v6860_v7  ;;  %5369 = vmatpush3.msra.mxu0 %v6865_v12 }
 0x61c   : > { %5402 = vmatpush3.msra.mxu1 %v6860_v7  ;;  %5370 = vmatprep.subr.mxu0 %v6875_v11 }
 0x61d   : > { %5403 = vmatprep.subr.mxu1 %v6867_v56  ;;  %5371 = vmatpush3.msra.mxu0 %v6875_v11 }
 0x61e   : > { %5404 = vmatpush3.msra.mxu1 %v6867_v56  ;;  %5372 = vmatprep.subr.mxu0 %v6887_v30 }
 0x61f   : > { %5405 = vmatprep.subr.mxu1 %v6877_v16  ;;  %5373 = vmatpush3.msra.mxu0 %v6887_v30 }
 0x620   : > { %5406 = vmatpush3.msra.mxu1 %v6877_v16  ;;  %5375 = vmatmul.mubr.f32.vlgmr.msra.gmra.mxu0 %v2843_v58  ;;  %v6965_v58 = vand.u32 4294901760, %v223_v25 }
 0x621   : > { %5388 = vmatprep.subr.mxu0 %v6870_v5  ;;  %5408 = vmatmul.mubr.f32.vlgmr.msra.gmra.mxu1 %v2842_v23 }
 0x622   : > { %5389 = vmatpush3.msra.mxu0 %v6870_v5  ;;  %5396 = vmatprep.mubr.f32.mxu0 %v2832_v4  ;;  %v6969_v14 = vsub.f32 %v223_v25, %v6965_v58 }
 0x623   : > { %5390 = vmatprep.subr.mxu0 %v6882_v29  ;;  %5421 = vmatprep.subr.mxu1 %v3483_v24 }
 0x624   : > { %5391 = vmatpush3.msra.mxu0 %v6882_v29  ;;  %5422 = vmatpush3.msra.mxu1 %v3483_v24 }
 0x625   : > { %5392 = vmatprep.subr.mxu0 %v6892_v8 }
 0x626   : > { %5393 = vmatpush3.msra.mxu0 %v6892_v8 }
 0x627   : > { %5394 = vmatprep.subr.mxu0 %v6899_v33 }
 0x628   : > { %5395 = vmatpush3.msra.mxu0 %v6899_v33 }
 0x629   : > { %5397 = vmatmul.mubr.f32.vlgmr.msra.gmra.mxu0 %v2842_v23  ;;  %5410 = vmatprep.subr.mxu0 %v6952_v54 }
 0x62a   : > { %5411 = vmatpush3.msra.mxu0 %v6952_v54 }
 0x62b   : > { %5412 = vmatprep.subr.mxu0 %v6965_v58 }
 0x62c   : > { %5413 = vmatpush3.msra.mxu0 %v6965_v58 }
 0x62d   : > { %5414 = vmatprep.subr.mxu0 %v6971_v34 }
 0x62e   : > { %5415 = vmatpush3.msra.mxu0 %v6971_v34 }
 0x6cf   : > { %v5365_v3 = vpop.f32.mrf.mxu1 }
 0x6d1   : > { %v2939_v56 = vpop.f32.mrf.mxu1 }
 0x6d7   : > { %v5387_v11 = vpop.f32.mrf.mxu1 }
 0x6d8   : > { %v5354_v57 = vpop.f32.mrf.mxu0 }
 0x6d9   : > { %v2946_v5 = vadd.f32 %v5365_v3, %v5354_v57  ;;  %v3109_v28 = vpop.f32.mrf.mxu1  ;;  %v221_v3 = vld [vmem:[%s6022_s19 + $0x20] sm:$0xff] }
 0x6da   : > { %v2838_v7 = vpop.f32.mrf.mxu0 }
 0x6db   : > { %v2940_v30 = vadd.f32 %v2939_v56, %v2838_v7  ;;  %v6980_v56 = vsub.f32 %v222_v1, %v6971_v34 }
 0x6e0   : > { %v5376_v12 = vpop.f32.mrf.mxu0 }
 0x6e1   : > { %v3033_v42 = vadd.f32 %v5376_v12, %v2946_v5  ;;  %v5409_v48 = vpop.f32.mrf.mxu1  ;;  %v6977_v12 = vand.u32 4294901760, %v6969_v14  ;;  %v6982_v5 = vand.u32 4294901760, %v221_v3 }
 0x6e2   : > { %v3025_v16 = vpop.f32.mrf.mxu0 }
 0x6e3   : > { %v3026_v29 = vadd.f32 %v3025_v16, %v2940_v30  ;;  %v3118_v45 = vadd.f32 %v5387_v11, %v3033_v42  ;;  %v3281_v40 = vpop.f32.mrf.mxu1  ;;  %v3489_v30 = vsub.f32 %v6969_v14, %v6977_v12  ;;  %v6989_v42 = vand.u32 4294901760, %v6980_v56  ;;  %5416 = vmatprep.subr.mxu0 %v6982_v5 }
 0x6e4   : > { %5417 = vmatpush3.msra.mxu0 %v6982_v5 }
 0x6e5   : > { %v3110_v13 = vadd.f32 %v3109_v28, %v3026_v29  ;;  %v6992_v29 = vsub.f32 %v221_v3, %v6982_v5  ;;  %5432 = vmatprep.subr.mxu0 %v6955_v61 }
 0x6e9   : > { %v5398_v8 = vpop.f32.mrf.mxu0 }
 0x6ea   : > { %v3207_v51 = vadd.f32 %v5398_v8, %v3118_v45  ;;  %v3490_v45 = vand.u32 4294901760, %v3489_v30  ;;  %v6999_v8 = vand.u32 4294901760, %v6992_v29 }
 0x6eb   : > { %v3200_v35 = vpop.f32.mrf.mxu0 }
 0x6ec   : > { %v3288_v33 = vadd.f32 %v5409_v48, %v3207_v51  ;;  %v3201_v39 = vadd.f32 %v3200_v35, %v3110_v13  ;;  %v3496_v48 = vsub.f32 %v6980_v56, %v6989_v42  ;;  %5423 = vmatprep.subr.mxu1 %v3490_v45  ;;  %v3503_v13 = vsub.f32 %v6992_v29, %v6999_v8 }
 0x6ed   : > { %5424 = vmatpush3.msra.mxu1 %v3490_v45 }
 0x6ee   : > { %v3282_v43 = vadd.f32 %v3281_v40, %v3201_v39  ;;  %v3292_v44 = vadd.f32 %v5691_v41, %v3288_v33  ;;  %v3497_v51 = vand.u32 4294901760, %v3496_v48  ;;  %v3504_v35 = vand.u32 4294901760, %v3503_v13  ;;  %v5693_v39 = vld [vmem:[%s6022_s19 + $0x88] ss:$0 sm:$0xff] }
 0x6f0   : > { %v3291_v46 = vadd.f32 %v5692_v63, %v3282_v43  ;;  %v6937_v50 = vadd.f32 %v3295_v2, %v3292_v44  ;;  %5425 = vmatprep.subr.mxu1 %v3497_v51 }
 0x6f1   : > { %5426 = vmatpush3.msra.mxu1 %v3497_v51 }
 0x6f2   : > { %v6939_v17 = vadd.f32 %v3295_v2, %v3291_v46  ;;  %v3302_v19 = vsel %vm236_vm1, %v6937_v50, 0.0  ;;  %5427 = vmatprep.subr.mxu1 %v3504_v35 }
 0x6f3   : > { %3303 = vadd.xlane.f32.xlu1 %v3302_v19  ;;  %5428 = vmatpush3.msra.mxu1 %v3504_v35 }
 0x6f4   : > { %v3299_v6 = vsel %vm236_vm1, %v6939_v17, 0.0  ;;  %5443 = vmatprep.subr.mxu1 %v6952_v54 }
 0x6f5   : > { %3300 = vadd.xlane.f32.xlu0 %v3299_v6 }
 0x77c   : > { %v3304_v52 = vpop.xlane.xlu1 %3303 }
 0x77d   : > { %v3306_v22 = vmul.f32 0.03125, %v3304_v52 }
 0x77e   : > { %v3301_v55 = vpop.xlane.xlu0 %3300 }
 0x77f   : > { %v3308_v21 = vsub.f32 %v6937_v50, %v3306_v22  ;;  %v3305_v26 = vmul.f32 0.03125, %v3301_v55 }
 0x781   : > { %v3307_v0 = vsub.f32 %v6939_v17, %v3305_v26  ;;  %3323 = vrot.lane.b32.xlu1 %v3308_v21, %s5861_s24  ;;  %v3310_v53 = vmul.f32 %v3308_v21, %v3308_v21 }
 0x783   : > { %v3309_v27 = vmul.f32 %v3307_v0, %v3307_v0  ;;  %v3314_v60 = vsel %vm236_vm1, %v3310_v53, 0.0 }
 0x785   : > { %v3311_v49 = vsel %vm236_vm1, %v3309_v27, 0.0 }
 0x786   : > { %3312 = vadd.xlane.f32.xlu0 %v3311_v49 }
 0x78a   : > { %3315 = vadd.xlane.f32.xlu0 %v3314_v60 }
 0x7a0   : > { %3321 = vrot.lane.b32.xlu0 %v3307_v0, %s5861_s24 }
 0x7f3   : > { %v3324_v43 = vpop.permute.xlu1 %3323 }
 0x7f4   : > { %v3328_v44 = vmul.f32 %v5693_v39, %v3324_v43 }
 0x80f   : > { %v3313_v36 = vpop.xlane.xlu0 %3312 }
 0x810   : > { %v3317_v18 = vmul.f32 0.032258064, %v3313_v36  ;;  %v5695_v36 = vld [vmem:[%s6022_s19 + $0x70] sm:$0xff] }
 0x812   : > { %5683 = vrsqrt.f32 %v3317_v18  ;;  %vm3331_vm7 = vcmp.eq.f32.partialorder %v3317_v18, inf  ;;  %v3334_v4 = vand.u32 2147483648, %v3317_v18  ;;  %vm3333_vm8 = vcmp.eq.f32.partialorder %v3317_v18, 0.0 }
 0x813   : > { %v3316_v20 = vpop.xlane.xlu0 %3315 }
 0x814   : > { %v3318_v62 = vmul.f32 0.032258064, %v3316_v20 }
 0x816   : > { %5685 = vrsqrt.f32 %v3318_v62  ;;  %vm3338_vm9 = vcmp.eq.f32.partialorder %v3318_v62, inf  ;;  %v3341_v7 = vand.u32 2147483648, %v3318_v62  ;;  %vm3340_vm10 = vcmp.eq.f32.partialorder %v3318_v62, 0.0 }
 0x817   : > { %v3322_v33 = vpop.permute.xlu0 %3321 }
 0x818   : > { %v3327_v40 = vmul.f32 %v5693_v39, %v3322_v33 }
 0x81f   : > { %v5684_v38 = vpop.eup %5683 }
 0x820   : > { %v3330_v23 = vmul.f32 %v5684_v38, %v3317_v18 }
 0x822   : > { %v3332_v31 = vsel %vm3331_vm7, %v3317_v18, %v3330_v23  ;;  %v5696_v18 = vld [vmem:[%s6022_s19 + $0x68] sm:$0xff]  ;;  %v5698_v23 = vld [vmem:[%s6022_s19 + $0x58] sm:$0xff] }
 0x823   : > { %v5686_v47 = vpop.eup %5685  ;;  %v3335_v32 = vsel %vm3333_vm8, %v3334_v4, %v3332_v31  ;;  %v7051_v20 = vand.u32 4294901760, %v5696_v18  ;;  %v7061_v25 = vand.u32 4294901760, %v5698_v23  ;;  %v5699_v4 = vld [vmem:[%s6022_s19 + $0x50] sm:$0xff]  ;;  %v5700_v31 = vld [vmem:[%s6022_s19 + $0x48] sm:$0xff] }
 0x824   : > { %v3337_v37 = vmul.f32 %v5686_v47, %v3318_v62  ;;  %v3343_v57 = vadd.f32 1e-06, %v3335_v32  ;;  %v7071_v1 = vand.u32 4294901760, %v5700_v31  ;;  %v5701_v47 = vld [vmem:[%s6022_s19 + $0x40] sm:$0xff] }
 0x825   : > { %v7076_v32 = vand.u32 4294901760, %v5701_v47 }
 0x826   : > { %v3339_v11 = vsel %vm3338_vm9, %v3318_v62, %v3337_v37  ;;  %5687 = vrcp.f32 %v3343_v57  ;;  %v5697_v62 = vld [vmem:[%s6022_s19 + $0x60] sm:$0xff]  ;;  %v7132_v39 = vsub.f32 %v5700_v31, %v7071_v1 }
 0x827   : > { %v3342_v16 = vsel %vm3340_vm10, %v3341_v7, %v3339_v11  ;;  %v7056_v38 = vand.u32 4294901760, %v5697_v62 }
 0x828   : > { %v3344_v28 = vadd.f32 1e-06, %v3342_v16  ;;  %v7137_v43 = vand.u32 4294901760, %v7132_v39 }
 0x829   : > { %v7108_v16 = vsub.f32 %v5697_v62, %v7056_v38 }
 0x82a   : > { %5689 = vrcp.f32 %v3344_v28  ;;  %v7116_v28 = vsub.f32 %v5698_v23, %v7061_v25 }
 0x833   : > { %v5688_v2 = vpop.eup %5687 }
 0x834   : > { %v3346_v41 = vmul.f32 %v5688_v2, %v3327_v40 }
 0x836   : > { %v3349_v63 = vadd.f32 %v3346_v41, %v6119_v59  ;;  %v7140_v41 = vsub.f32 %v5701_v47, %v7076_v32 }
 0x837   : > { %v5690_v46 = vpop.eup %5689 }
 0x838   : > { %3357 = vrot.lane.b32.xlu1 %v3349_v63, %s5861_s24  ;;  %v3348_v19 = vmul.f32 %v5690_v46, %v3328_v44  ;;  %v4056_v63 = vsub.f32 %v7132_v39, %v7137_v43  ;;  %v7145_v46 = vand.u32 4294901760, %v7140_v41 }
 0x83a   : > { %v3350_v6 = vadd.f32 %v3348_v19, %v6119_v59  ;;  %v4057_v19 = vand.u32 4294901760, %v4056_v63 }
 0x83c   : > { %3359 = vrot.lane.b32.xlu1 %v3350_v6, %s5861_s24  ;;  %v4063_v6 = vsub.f32 %v7140_v41, %v7145_v46 }
 0x8aa   : > { %v3358_v52 = vpop.permute.xlu1 %3357 }
 0x8ab   : > { %v3361_v22 = vsel %vm236_vm1, %v3358_v52, 0  ;;  %v4064_v52 = vand.u32 4294901760, %v4063_v6 }
 0x8ac   : > { %v3434_v55 = vand.u32 4294901760, %v3361_v22 }
 0x8ae   : > { %v3435_v21 = vsub.f32 %v3361_v22, %v3434_v55  ;;  %5429 = vmatprep.mubr.f32.mxu1 %v3434_v55  ;;  %v3360_v26 = vpop.permute.xlu1 %3359 }
 0x8af   : > { %v3363_v0 = vsel %vm236_vm1, %v3360_v26, 0 }
 0x8b0   : > { %v3444_v27 = vand.u32 4294901760, %v3363_v0  ;;  %v3436_v49 = vand.u32 4294901760, %v3435_v21 }
 0x8b2   : > { %v3445_v53 = vsub.f32 %v3363_v0, %v3444_v27  ;;  %5430 = vmatmul.mubr.f32.vlgmr.msra.gmra.mxu1 %v3444_v27  ;;  %v3437_v60 = vsub.f32 %v3435_v21, %v3436_v49 }
 0x8b3   : > { %5444 = vmatpush3.msra.mxu1 %v6952_v54  ;;  %5451 = vmatprep.mubr.f32.mxu1 %v3436_v49 }
 0x8b4   : > { %v3446_v59 = vand.u32 4294901760, %v3445_v53  ;;  %5445 = vmatprep.subr.mxu1 %v6965_v58  ;;  %v3438_v15 = vand.u32 4294901760, %v3437_v60 }
 0x8b5   : > { %5446 = vmatpush3.msra.mxu1 %v6965_v58 }
 0x8b6   : > { %v3447_v9 = vsub.f32 %v3445_v53, %v3446_v59  ;;  %5447 = vmatprep.subr.mxu1 %v6971_v34  ;;  %5418 = vmatprep.mubr.f32.mxu0 %v3438_v15 }
 0x8b7   : > { %5448 = vmatpush3.msra.mxu1 %v6971_v34 }
 0x8b8   : > { %v3448_v24 = vand.u32 4294901760, %v3447_v9  ;;  %5449 = vmatprep.subr.mxu1 %v6982_v5 }
 0x8b9   : > { %5450 = vmatpush3.msra.mxu1 %v6982_v5 }
 0x8ba   : > { %5452 = vmatmul.mubr.f32.vlgmr.msra.gmra.mxu1 %v3446_v59  ;;  %5465 = vmatprep.subr.mxu1 %v6952_v54 }
 0x8bb   : > { %5419 = vmatmul.mubr.f32.vlgmr.msra.gmra.mxu0 %v3448_v24  ;;  %5466 = vmatpush3.msra.mxu1 %v6952_v54  ;;  %v5694_v54 = vld [vmem:[%s6022_s19 + $0x78] sm:$0xff] }
 0x8bc   : > { %5433 = vmatpush3.msra.mxu0 %v6955_v61  ;;  %5473 = vmatprep.mubr.f32.mxu1 %v3434_v55  ;;  %v7041_v61 = vand.u32 4294901760, %v5694_v54 }
 0x8bd   : > { %5434 = vmatprep.subr.mxu0 %v6969_v14  ;;  %5440 = vmatprep.mubr.f32.mxu0 %v3435_v21 }
 0x8be   : > { %5467 = vmatprep.subr.mxu1 %v6965_v58  ;;  %5435 = vmatpush3.msra.mxu0 %v6969_v14  ;;  %v4583_v14 = vld [vmem:[%s6022_s19 + $0x90] ss:$0 sm:$0xff] }
 0x8bf   : > { %5468 = vmatpush3.msra.mxu1 %v6965_v58  ;;  %5436 = vmatprep.subr.mxu0 %v6980_v56  ;;  %v7066_v58 = vand.u32 4294901760, %v5699_v4 }
 0x8c0   : > { %5469 = vmatprep.subr.mxu1 %v6971_v34  ;;  %5437 = vmatpush3.msra.mxu0 %v6980_v56 }
 0x8c1   : > { %5470 = vmatpush3.msra.mxu1 %v6971_v34  ;;  %5438 = vmatprep.subr.mxu0 %v6992_v29  ;;  %v7085_v34 = vsub.f32 %v5694_v54, %v7041_v61  ;;  %v7124_v51 = vsub.f32 %v5699_v4, %v7066_v58 }
 0x8c2   : > { %5471 = vmatprep.subr.mxu1 %v6982_v5  ;;  %5439 = vmatpush3.msra.mxu0 %v6992_v29  ;;  %v7113_v29 = vand.u32 4294901760, %v7108_v16 }
 0x8c3   : > { %5472 = vmatpush3.msra.mxu1 %v6982_v5  ;;  %5441 = vmatmul.mubr.f32.vlgmr.msra.gmra.mxu0 %v3445_v53  ;;  %v7088_v37 = vand.u32 4294901760, %v7085_v34  ;;  %v7129_v33 = vand.u32 4294901760, %v7124_v51 }
 0x8c4   : > { %5454 = vmatprep.subr.mxu0 %v6960_v10  ;;  %5474 = vmatmul.mubr.f32.vlgmr.msra.gmra.mxu1 %v3444_v27  ;;  %v4035_v48 = vsub.f32 %v7108_v16, %v7113_v29 }
 0x8c5   : > { %5455 = vmatpush3.msra.mxu0 %v6960_v10  ;;  %5462 = vmatprep.mubr.f32.mxu0 %v3434_v55  ;;  %v7046_v10 = vand.u32 4294901760, %v5695_v36  ;;  %v4014_v3 = vsub.f32 %v7085_v34, %v7088_v37  ;;  %v4049_v2 = vsub.f32 %v7124_v51, %v7129_v33 }
 0x8c6   : > { %5456 = vmatprep.subr.mxu0 %v6977_v12  ;;  %4484 = vrot.lane.b32.xlu0 %v4583_v14, %s5861_s24  ;;  %v4036_v13 = vand.u32 4294901760, %v4035_v48 }
 0x8c7   : > { %5457 = vmatpush3.msra.mxu0 %v6977_v12  ;;  %v7091_v57 = vsub.f32 %v5695_v36, %v7046_v10  ;;  %v7100_v12 = vsub.f32 %v5696_v18, %v7051_v20  ;;  %v4015_v56 = vand.u32 4294901760, %v4014_v3  ;;  %v4050_v44 = vand.u32 4294901760, %v4049_v2 }
 0x8c8   : > { %5458 = vmatprep.subr.mxu0 %v6989_v42 }
 0x8c9   : > { %5459 = vmatpush3.msra.mxu0 %v6989_v42  ;;  %v7097_v7 = vand.u32 4294901760, %v7091_v57  ;;  %v7105_v11 = vand.u32 4294901760, %v7100_v12  ;;  %5495 = vmatprep.subr.mxu1 %v4015_v56 }
 0x8ca   : > { %5460 = vmatprep.subr.mxu0 %v6999_v8  ;;  %5496 = vmatpush3.msra.mxu1 %v4015_v56 }
 0x8cb   : > { %5461 = vmatpush3.msra.mxu0 %v6999_v8  ;;  %v4021_v5 = vsub.f32 %v7091_v57, %v7097_v7  ;;  %v4028_v42 = vsub.f32 %v7100_v12, %v7105_v11  ;;  %v7121_v8 = vand.u32 4294901760, %v7116_v28 }
 0x8cc   : > { %5463 = vmatmul.mubr.f32.vlgmr.msra.gmra.mxu0 %v3444_v27  ;;  %5476 = vmatprep.subr.mxu0 %v7041_v61 }
 0x8cd   : > { %5477 = vmatpush3.msra.mxu0 %v7041_v61  ;;  %v4022_v30 = vand.u32 4294901760, %v4021_v5  ;;  %v4029_v45 = vand.u32 4294901760, %v4028_v42  ;;  %v4042_v35 = vsub.f32 %v7116_v28, %v7121_v8 }
 0x8ce   : > { %5478 = vmatprep.subr.mxu0 %v7046_v10 }
 0x8cf   : > { %5479 = vmatpush3.msra.mxu0 %v7046_v10  ;;  %5497 = vmatprep.subr.mxu1 %v4022_v30  ;;  %v4043_v40 = vand.u32 4294901760, %v4042_v35 }
 0x8d0   : > { %5480 = vmatprep.subr.mxu0 %v7051_v20  ;;  %5498 = vmatpush3.msra.mxu1 %v4022_v30 }
 0x8d1   : > { %5481 = vmatpush3.msra.mxu0 %v7051_v20  ;;  %5499 = vmatprep.subr.mxu1 %v4029_v45 }
 0x8d2   : > { %5482 = vmatprep.subr.mxu0 %v7056_v38  ;;  %5500 = vmatpush3.msra.mxu1 %v4029_v45 }
 0x8d3   : > { %5483 = vmatpush3.msra.mxu0 %v7056_v38  ;;  %5501 = vmatprep.subr.mxu1 %v4036_v13 }
 0x8d4   : > { %5484 = vmatprep.subr.mxu0 %v7061_v25  ;;  %5502 = vmatpush3.msra.mxu1 %v4036_v13 }
 0x8d5   : > { %5485 = vmatpush3.msra.mxu0 %v7061_v25  ;;  %5503 = vmatprep.subr.mxu1 %v4043_v40 }
 0x8d6   : > { %5486 = vmatprep.subr.mxu0 %v7066_v58  ;;  %5504 = vmatpush3.msra.mxu1 %v4043_v40 }
 0x8d7   : > { %5487 = vmatpush3.msra.mxu0 %v7066_v58  ;;  %5505 = vmatprep.subr.mxu1 %v4050_v44 }
 0x8d8   : > { %5488 = vmatprep.subr.mxu0 %v7071_v1  ;;  %5506 = vmatpush3.msra.mxu1 %v4050_v44 }
 0x8d9   : > { %5489 = vmatpush3.msra.mxu0 %v7071_v1  ;;  %5507 = vmatprep.subr.mxu1 %v4057_v19 }
 0x8da   : > { %5490 = vmatprep.subr.mxu0 %v7076_v32  ;;  %5508 = vmatpush3.msra.mxu1 %v4057_v19 }
 0x8db   : > { %5491 = vmatpush3.msra.mxu0 %v7076_v32  ;;  %5509 = vmatprep.subr.mxu1 %v4064_v52 }
 0x8dc   : > { %5514 = vmatprep.subr.mxu0 %v7085_v34  ;;  %5510 = vmatpush3.msra.mxu1 %v4064_v52 }
 0x8dd   : > { %5533 = vmatprep.subr.mxu1 %v7041_v61 }
 0x972   : > { %v5431_v55 = vpop.f32.mrf.mxu1 }
 0x974   : > { %v3541_v49 = vpop.f32.mrf.mxu1 }
 0x97a   : > { %v5453_v60 = vpop.f32.mrf.mxu1 }
 0x97b   : > { %v5420_v22 = vpop.f32.mrf.mxu0 }
 0x97c   : > { %v3451_v26 = vadd.f32 %v5420_v22, %v4583_v14  ;;  %v3711_v54 = vpop.f32.mrf.mxu1 }
 0x97d   : > { %v3440_v21 = vpop.f32.mrf.mxu0 }
 0x97e   : > { %v3441_v0 = vadd.f32 %v4583_v14, %v3440_v21  ;;  %v3548_v53 = vadd.f32 %v5431_v55, %v3451_v26 }
 0x980   : > { %v3542_v9 = vadd.f32 %v3541_v49, %v3441_v0 }
 0x983   : > { %v5442_v27 = vpop.f32.mrf.mxu0 }
 0x984   : > { %v3635_v15 = vadd.f32 %v5442_v27, %v3548_v53  ;;  %v5475_v18 = vpop.f32.mrf.mxu1 }
 0x985   : > { %v3627_v59 = vpop.f32.mrf.mxu0 }
 0x986   : > { %v3628_v24 = vadd.f32 %v3627_v59, %v3542_v9  ;;  %v3720_v36 = vadd.f32 %v5453_v60, %v3635_v15  ;;  %v3883_v56 = vpop.f32.mrf.mxu1 }
 0x988   : > { %v3712_v4 = vadd.f32 %v3711_v54, %v3628_v24 }
 0x98c   : > { %v5464_v62 = vpop.f32.mrf.mxu0 }
 0x98d   : > { %v3809_v23 = vadd.f32 %v5464_v62, %v3720_v36 }
 0x98e   : > { %v3802_v31 = vpop.f32.mrf.mxu0 }
 0x98f   : > { %v3890_v47 = vadd.f32 %v5475_v18, %v3809_v23  ;;  %v3803_v3 = vadd.f32 %v3802_v31, %v3712_v4 }
 0x991   : > { %v3894_v5 = vmax.f32 %v3890_v47, 0.0  ;;  %v3884_v14 = vadd.f32 %v3883_v56, %v3803_v3 }
 0x993   : > { %v3899_v30 = vsel %vm1502_vm6, %v3894_v5, 0  ;;  %v3893_v42 = vmax.f32 %v3884_v14, 0.0 }
 0x994   : > { %v7151_v45 = vand.u32 4294901760, %v3899_v30 }
 0x995   : > { %v3896_v48 = vsel %vm1502_vm6, %v3893_v42, 0 }
 0x996   : > { %v3985_v13 = vsub.f32 %v3899_v30, %v7151_v45  ;;  %v3974_v35 = vand.u32 4294901760, %v3896_v48 }
 0x998   : > { %v3975_v40 = vsub.f32 %v3896_v48, %v3974_v35  ;;  %5511 = vmatprep.mubr.f32.mxu1 %v3974_v35  ;;  %v3986_v2 = vand.u32 4294901760, %v3985_v13 }
 0x999   : > { %5512 = vmatmul.mubr.f32.vlgmr.msra.gmra.mxu1 %v7151_v45 }
 0x99a   : > { %5534 = vmatpush3.msra.mxu1 %v7041_v61  ;;  %v3976_v44 = vand.u32 4294901760, %v3975_v40  ;;  %v3987_v63 = vsub.f32 %v3985_v13, %v3986_v2 }
 0x99b   : > { %5535 = vmatprep.subr.mxu1 %v7046_v10 }
 0x99c   : > { %5536 = vmatpush3.msra.mxu1 %v7046_v10  ;;  %5549 = vmatprep.mubr.f32.mxu1 %v3976_v44  ;;  %v3977_v19 = vsub.f32 %v3975_v40, %v3976_v44  ;;  %v3988_v52 = vand.u32 4294901760, %v3987_v63 }
 0x99d   : > { %5537 = vmatprep.subr.mxu1 %v7051_v20 }
 0x99e   : > { %5538 = vmatpush3.msra.mxu1 %v7051_v20  ;;  %v3978_v6 = vand.u32 4294901760, %v3977_v19 }
 0x99f   : > { %5539 = vmatprep.subr.mxu1 %v7056_v38 }
 0x9a0   : > { %5540 = vmatpush3.msra.mxu1 %v7056_v38  ;;  %5492 = vmatprep.mubr.f32.mxu0 %v3978_v6 }
 0x9a1   : > { %5541 = vmatprep.subr.mxu1 %v7061_v25  ;;  %5493 = vmatmul.mubr.f32.vlgmr.msra.gmra.mxu0 %v3988_v52 }
 0x9a2   : > { %5515 = vmatpush3.msra.mxu0 %v7085_v34  ;;  %5542 = vmatpush3.msra.mxu1 %v7061_v25 }
 0x9a3   : > { %5516 = vmatprep.subr.mxu0 %v7091_v57  ;;  %5530 = vmatprep.mubr.f32.mxu0 %v3975_v40 }
 0x9a4   : > { %5543 = vmatprep.subr.mxu1 %v7066_v58  ;;  %5517 = vmatpush3.msra.mxu0 %v7091_v57 }
 0x9a5   : > { %5544 = vmatpush3.msra.mxu1 %v7066_v58  ;;  %5518 = vmatprep.subr.mxu0 %v7100_v12 }
 0x9a6   : > { %5545 = vmatprep.subr.mxu1 %v7071_v1  ;;  %5519 = vmatpush3.msra.mxu0 %v7100_v12 }
 0x9a7   : > { %5546 = vmatpush3.msra.mxu1 %v7071_v1  ;;  %5520 = vmatprep.subr.mxu0 %v7108_v16 }
 0x9a8   : > { %5547 = vmatprep.subr.mxu1 %v7076_v32  ;;  %5521 = vmatpush3.msra.mxu0 %v7108_v16 }
 0x9a9   : > { %5548 = vmatpush3.msra.mxu1 %v7076_v32  ;;  %5522 = vmatprep.subr.mxu0 %v7116_v28 }
 0x9aa   : > { %5550 = vmatmul.mubr.f32.vlgmr.msra.gmra.mxu1 %v3986_v2  ;;  %5571 = vmatprep.subr.mxu1 %v7041_v61 }
 0x9ab   : > { %5523 = vmatpush3.msra.mxu0 %v7116_v28  ;;  %5572 = vmatpush3.msra.mxu1 %v7041_v61 }
 0x9ac   : > { %5587 = vmatprep.mubr.f32.mxu1 %v3974_v35  ;;  %5524 = vmatprep.subr.mxu0 %v7124_v51 }
 0x9ad   : > { %5573 = vmatprep.subr.mxu1 %v7046_v10  ;;  %5525 = vmatpush3.msra.mxu0 %v7124_v51 }
 0x9ae   : > { %5574 = vmatpush3.msra.mxu1 %v7046_v10  ;;  %5526 = vmatprep.subr.mxu0 %v7132_v39 }
 0x9af   : > { %5575 = vmatprep.subr.mxu1 %v7051_v20  ;;  %5527 = vmatpush3.msra.mxu0 %v7132_v39 }
 0x9b0   : > { %5576 = vmatpush3.msra.mxu1 %v7051_v20  ;;  %5528 = vmatprep.subr.mxu0 %v7140_v41 }
 0x9b1   : > { %5577 = vmatprep.subr.mxu1 %v7056_v38  ;;  %5529 = vmatpush3.msra.mxu0 %v7140_v41 }
 0x9b2   : > { %5578 = vmatpush3.msra.mxu1 %v7056_v38  ;;  %5531 = vmatmul.mubr.f32.vlgmr.msra.gmra.mxu0 %v3985_v13 }
 0x9b3   : > { %5552 = vmatprep.subr.mxu0 %v7088_v37  ;;  %5579 = vmatprep.subr.mxu1 %v7061_v25 }
 0x9b4   : > { %5553 = vmatpush3.msra.mxu0 %v7088_v37  ;;  %5568 = vmatprep.mubr.f32.mxu0 %v3974_v35 }
 0x9b5   : > { %5580 = vmatpush3.msra.mxu1 %v7061_v25  ;;  %5554 = vmatprep.subr.mxu0 %v7097_v7 }
 0x9b6   : > { %5581 = vmatprep.subr.mxu1 %v7066_v58  ;;  %5555 = vmatpush3.msra.mxu0 %v7097_v7 }
 0x9b7   : > { %5582 = vmatpush3.msra.mxu1 %v7066_v58  ;;  %5556 = vmatprep.subr.mxu0 %v7105_v11 }
 0x9b8   : > { %5583 = vmatprep.subr.mxu1 %v7071_v1  ;;  %5557 = vmatpush3.msra.mxu0 %v7105_v11 }
 0x9b9   : > { %5584 = vmatpush3.msra.mxu1 %v7071_v1  ;;  %5558 = vmatprep.subr.mxu0 %v7113_v29 }
 0x9ba   : > { %5585 = vmatprep.subr.mxu1 %v7076_v32  ;;  %5559 = vmatpush3.msra.mxu0 %v7113_v29 }
 0x9bb   : > { %5586 = vmatpush3.msra.mxu1 %v7076_v32  ;;  %5560 = vmatprep.subr.mxu0 %v7121_v8 }
 0x9bc   : > { %5588 = vmatmul.mubr.f32.vlgmr.msra.gmra.mxu1 %v7151_v45  ;;  %5561 = vmatpush3.msra.mxu0 %v7121_v8 }
 0x9bd   : > { %5562 = vmatprep.subr.mxu0 %v7129_v33 }
 0x9be   : > { %5563 = vmatpush3.msra.mxu0 %v7129_v33 }
 0x9bf   : > { %5564 = vmatprep.subr.mxu0 %v7137_v43 }
 0x9c0   : > { %5565 = vmatpush3.msra.mxu0 %v7137_v43  ;;  %v4485_v43 = vpop.permute.xlu0 %4484 }
 0x9c1   : > { %5566 = vmatprep.subr.mxu0 %v7145_v46 }
 0x9c2   : > { %5567 = vmatpush3.msra.mxu0 %v7145_v46 }
 0x9c3   : > { %5569 = vmatmul.mubr.f32.vlgmr.msra.gmra.mxu0 %v7151_v45 }
 0xa59   : > { %v5513_v10 = vpop.f32.mrf.mxu1 }
 0xa5b   : > { %v4101_v25 = vpop.f32.mrf.mxu1 }
 0xa61   : > { %v5494_v61 = vpop.f32.mrf.mxu0 }
 0xa62   : > { %v4108_v58 = vadd.f32 %v5513_v10, %v5494_v61 }
 0xa63   : > { %v3980_v20 = vpop.f32.mrf.mxu0 }
 0xa64   : > { %v4102_v34 = vadd.f32 %v4101_v25, %v3980_v20 }
 0xa6a   : > { %v5551_v1 = vpop.f32.mrf.mxu1 }
 0xa6c   : > { %v4283_v7 = vpop.f32.mrf.mxu1 }
 0xa72   : > { %v5532_v38 = vpop.f32.mrf.mxu0 }
 0xa73   : > { %v4203_v37 = vadd.f32 %v5532_v38, %v4108_v58 }
 0xa74   : > { %v4195_v32 = vpop.f32.mrf.mxu0 }
 0xa75   : > { %v4196_v57 = vadd.f32 %v4195_v32, %v4102_v34  ;;  %v4292_v12 = vadd.f32 %v5551_v1, %v4203_v37 }
 0xa77   : > { %v4284_v28 = vadd.f32 %v4283_v7, %v4196_v57 }
 0xa7c   : > { %v5589_v11 = vpop.f32.mrf.mxu1 }
 0xa7e   : > { %v4471_v39 = vpop.f32.mrf.mxu1 }
 0xa83   : > { %v5570_v16 = vpop.f32.mrf.mxu0 }
 0xa84   : > { %v4393_v29 = vadd.f32 %v5570_v16, %v4292_v12 }
 0xa85   : > { %v4386_v8 = vpop.f32.mrf.mxu0 }
 0xa86   : > { %v4478_v51 = vadd.f32 %v5589_v11, %v4393_v29  ;;  %v4387_v33 = vadd.f32 %v4386_v8, %v4284_v28 }
 0xa88   : > { %v4472_v41 = vadd.f32 %v4471_v39, %v4387_v33  ;;  %v4482_v46 = vadd.f32 %v4478_v51, %v6937_v50 }
 0xa8a   : > { %v4481_v22 = vadd.f32 %v4472_v41, %v6939_v17  ;;  %v4488_v55 = vadd.f32 %v4485_v43, %v4482_v46 }
 0xa8c   : > { %v4487_v21 = vadd.f32 %v4485_v43, %v4481_v22  ;;  %4490 = vst.msk [vmem:[#allocation2 + $0x8] sm:$0xff] %vm236_vm1, %v4488_v55  ;;  %4492 = vst.msk [vmem:[#allocation9 + $0x8] sm:$0xff] %vm236_vm1, %v4488_v55 }
 0xa8e   : > { %4489 = vst.msk [vmem:[#allocation2] sm:$0xff] %vm236_vm1, %v4487_v21  ;;  %4491 = vst.msk [vmem:[#allocation9] sm:$0xff] %vm236_vm1, %v4487_v21 }
 0xa8f   : > { %5795 = shalt.err (!%p5792_p12)
}
 0xa90   : > { %s5863_s4 = smov 128   ;;  %s5864_s5 = smov 8  }
 0xa91   : > { %5604 = dma.vmem_to_hbm [thread:$0]  (%p5623_p9), %s4500_s26, 256, %s7254_s3, [#allocation5], %s5863_s4, %s5863_s4, %s5864_s5  }
 0xa92   : > { %5835 = dma.done.wait (%p5623_p9), [#allocation5], 256  }
 0xa93   : > { %5837 = vsyncadd (%p5623_p9), [#allocation5], 4294967040 }
 0xa94 PF: > { %p13_p11 = scmp.ge.s32.totalorder %s5907_s17, 4   ;;  %s7270_s12 = smov %s5844_s13 }
 0xa95   : > { %s7271_s13 = smov %s5848_s14  ;;  %s7272_s14 = smov %s5917_s20 }
 0xa96   : > { %s7273_s15 = smov %s5907_s17  ;;  %15 = sbr.rel (!%p13_p11) target bundleno = 4 (0x4), region = 80 }
 0xa9b   :  { %4515 = vsyncpa [#allocation4], 1 }
 0xa9c   :  { %4517 = vsyncpa [#allocation4 + $0x1], 1 }
 0xa9d   :  { %4518 = vsyncpa [#allocation7], 1 }
 0xa9e   :  { %4519 = vsyncpa [#allocation5], 1 }
 0xa9f   :  { %4521 = vsyncpa [#allocation5 + $0x1], 1 }

</bundles_post_ra>
